<compile_context>
chip_gen: v7x
topology: tpu7x:2x2x1
jax: 0.10.0
libtpu: 0.0.40
codegen_flags: <defaults>
</compile_context>

<pallas_src>
import math

import jax
import jax.numpy as jnp
from jax import lax
from jax.experimental import pallas as pl
from jax.experimental.pallas import tpu as pltpu

# Small, shape-consistent config (input_size = njoints * nfeats)
NJOINTS = 6
NFEATS = 3
INPUT_SIZE = NJOINTS * NFEATS   # 18
HIDDEN_SIZE = 32
HIDDEN_LAYER = 2
LIN1_SIZE = 30
OUTPUT_SIZE = 12


# ----------------------------- Pallas kernel ------------------------------- #

def _gru_recurrence(gi_r, gi_z, gi_n, whh_r, whh_z, whh_n, bhn_b, h0,
                    T, Bp, len_b=None):
    """Run T GRU steps with hoisted input projections.

    gi_* : (T*Bp, H) input projections, biases already folded (except b_hn).
    whh_*: (H, H) gate-split recurrent weights.
    bhn_b: (Bp, H) pre-broadcast b_hn.
    h0   : (Bp, H) initial hidden state (carried in registers).
    len_b: optional (Bp, H) int32 broadcast lengths; if given, also return the
           hidden state captured at t == len-1 (the PyTorch gather).
    """
    H = h0.shape[1]
    h = h0
    outs = []
    sel = jnp.zeros((Bp, H), jnp.float32) if len_b is not None else None
    # T is a static Python int: this loop is fully unrolled at trace time
    # (equivalent to lax.fori_loop(..., unroll=True)); all shapes are tiny so
    # vreg pressure is a non-issue.
    for t in range(T):
        gi_r_t = gi_r[t * Bp:(t + 1) * Bp]
        gi_z_t = gi_z[t * Bp:(t + 1) * Bp]
        gi_n_t = gi_n[t * Bp:(t + 1) * Bp]
        gh_r = jnp.dot(h, whh_r, preferred_element_type=jnp.float32)
        gh_z = jnp.dot(h, whh_z, preferred_element_type=jnp.float32)
        gh_n = jnp.dot(h, whh_n, preferred_element_type=jnp.float32)
        r = jax.nn.sigmoid(gi_r_t + gh_r)
        z = jax.nn.sigmoid(gi_z_t + gh_z)
        n = jnp.tanh(gi_n_t + r * (gh_n + bhn_b))
        h = (1.0 - z) * n + z * h
        outs.append(h)
        if len_b is not None:
            sel = jnp.where(len_b == (t + 1), h, sel)
    return outs, sel


def fused_motion_discriminator_kernel(
        len_ref, x_ref,
        wih0_ref, bgi0_ref, whh0_ref, bhn0_ref, h00_ref,
        wih1_ref, bgi1_ref, whh1_ref, bhn1_ref, h01_ref,
        w1_ref, b1_ref, w2_ref, b2_ref,
        out_ref):
    """Single fused forward pass.

    len_ref : (Bp, 1) int32       x_ref  : (T*Bp, D0) f32 (time-major rows)
    wihL    : (D_in, 3H)          bgiL   : (1, 3H)   (b_ih with b_hr/b_hz folded in)
    whhL    : (3, H, H)           bhnL   : (1, H)    h0L: (Bp, H)
    w1: (H, 30)  b1: (1, 30)  w2: (30, 12)  b2: (1, 12)   out_ref: (Bp, 12)
    """
    Bp, H = h00_ref.shape
    T = x_ref.shape[0] // Bp

    # ---- layer 0: hoisted input projection (ONE matmul for all T steps) ----
    gi0 = jnp.dot(x_ref[...], wih0_ref[...],
                  preferred_element_type=jnp.float32) + bgi0_ref[...]
    gi0_r = gi0[:, 0:H]
    gi0_z = gi0[:, H:2 * H]
    gi0_n = gi0[:, 2 * H:3 * H]
    bhn0_b = jnp.broadcast_to(bhn0_ref[...], (Bp, H))
    outs0, _ = _gru_recurrence(gi0_r, gi0_z, gi0_n,
                               whh0_ref[0], whh0_ref[1], whh0_ref[2],
                               bhn0_b, h00_ref[...], T, Bp)
    out0_2d = jnp.concatenate(outs0, axis=0)          # (T*Bp, H), stays on-chip

    # ---- layer 1: same structure, plus on-the-fly length selection ---------
    gi1 = jnp.dot(out0_2d, wih1_ref[...],
                  preferred_element_type=jnp.float32) + bgi1_ref[...]
    gi1_r = gi1[:, 0:H]
    gi1_z = gi1[:, H:2 * H]
    gi1_n = gi1[:, 2 * H:3 * H]
    bhn1_b = jnp.broadcast_to(bhn1_ref[...], (Bp, H))
    len_b = jnp.broadcast_to(len_ref[...], (Bp, H))   # broadcast once, not per step
    _, sel = _gru_recurrence(gi1_r, gi1_z, gi1_n,
                             whh1_ref[0], whh1_ref[1], whh1_ref[2],
                             bhn1_b, h01_ref[...], T, Bp, len_b=len_b)

    # ---- head: linear1 -> tanh -> linear2 ----------------------------------
    lin1 = jnp.tanh(jnp.dot(sel, w1_ref[...],
                            preferred_element_type=jnp.float32) + b1_ref[...])
    out_ref[...] = (jnp.dot(lin1, w2_ref[...],
                            preferred_element_type=jnp.float32) + b2_ref[...])


# ------------------------------- Wrapper ------------------------------------ #

def _prep_layer(w_ih, w_hh, b_ih, b_hh, H):
    """Gate-split recurrent weights and fold biases (done once, outside kernel)."""
    # r/z gates: both biases can be folded into the hoisted input projection.
    # n gate: b_hn must stay inside the r * (.) term, only b_in is folded.
    bgi = b_ih + jnp.concatenate(
        [b_hh[:, :2 * H], jnp.zeros((1, H), jnp.float32)], axis=1)
    whh_split = jnp.stack(
        [w_hh[:, 0:H], w_hh[:, H:2 * H], w_hh[:, 2 * H:3 * H]], axis=0)  # (3,H,H)
    bhn = b_hh[:, 2 * H:3 * H]
    return w_ih, bgi, whh_split, bhn


@jax.jit
def motion_discriminator_forward(params, motion_sequence, lengths):
    bs, njoints, nfeats, num_frames = motion_sequence.shape
    D = njoints * nfeats
    H = HIDDEN_SIZE
    T = num_frames

    # (B, J, F, T) -> (T, B, D), as in the PyTorch forward.
    seq = jnp.transpose(motion_sequence.reshape(bs, D, T), (2, 0, 1))
    seq = seq.astype(jnp.float32)

    # Pad batch to an f32 sublane multiple (8) so vector ops/stores are unmasked.
    Bp = max(8, ((bs + 7) // 8) * 8)
    seq_p = jnp.pad(seq, ((0, 0), (0, Bp - bs), (0, 0)))
    seq2d = seq_p.reshape(T * Bp, D)                     # time-major rows
    # Assumption: 1 <= lengths <= T (as required by the PyTorch gather).
    len_p = jnp.pad(lengths.astype(jnp.int32), (0, Bp - bs),
                    constant_values=1).reshape(Bp, 1)
    h0_p = jnp.pad(params["h0"], ((0, 0), (0, Bp - bs), (0, 0)))  # (L, Bp, H)

    wih0, bgi0, whh0, bhn0 = _prep_layer(params["w_ih"][0], params["w_hh"][0],
                                         params["b_ih"][0], params["b_hh"][0], H)
    wih1, bgi1, whh1, bhn1 = _prep_layer(params["w_ih"][1], params["w_hh"][1],
                                         params["b_ih"][1], params["b_hh"][1], H)

    vmem = pl.BlockSpec(memory_space=pltpu.MemorySpace.VMEM)
    out_pad = pl.pallas_call(
        fused_motion_discriminator_kernel,
        out_shape=jax.ShapeDtypeStruct((Bp, OUTPUT_SIZE), jnp.float32),
        in_specs=[vmem] * 16,
        out_specs=vmem,
    )(len_p, seq2d,
      wih0, bgi0, whh0, bhn0, h0_p[0],
      wih1, bgi1, whh1, bhn1, h0_p[1],
      params["w1"], params["b1"], params["w2"], params["b2"])
    # TODO(synk): for large batches, add a batch-parallel grid axis
    # (dimension_semantics=("parallel",)) so both v7x TensorCores are used.
    return out_pad[:bs]


# ------------------------------ Parameters ---------------------------------- #

def init_params(key, input_size, hidden_size, num_layers, lin1_size,
                output_size, batch_size):
    params = {"w_ih": [], "w_hh": [], "b_ih": [], "b_hh": []}
    stdv = 1.0 / math.sqrt(hidden_size)
    k = key
    for l in range(num_layers):
        d_in = input_size if l == 0 else hidden_size
        k, k1, k2, k3, k4 = jax.random.split(k, 5)
        params["w_ih"].append(jax.random.uniform(
            k1, (d_in, 3 * hidden_size), jnp.float32, -stdv, stdv))
        params["w_hh"].append(jax.random.uniform(
            k2, (hidden_size, 3 * hidden_size), jnp.float32, -stdv, stdv))
        params["b_ih"].append(jax.random.uniform(
            k3, (1, 3 * hidden_size), jnp.float32, -stdv, stdv))
        params["b_hh"].append(jax.random.uniform(
            k4, (1, 3 * hidden_size), jnp.float32, -stdv, stdv))
    k, k1, k2, k3, k4, k5 = jax.random.split(k, 6)
    s1 = 1.0 / math.sqrt(hidden_size)
    params["w1"] = jax.random.uniform(k1, (hidden_size, lin1_size), jnp.float32, -s1, s1)
    params["b1"] = jax.random.uniform(k2, (1, lin1_size), jnp.float32, -s1, s1)
    s2 = 1.0 / math.sqrt(lin1_size)
    params["w2"] = jax.random.uniform(k3, (lin1_size, output_size), jnp.float32, -s2, s2)
    params["b2"] = jax.random.uniform(k4, (1, output_size), jnp.float32, -s2, s2)
    # TODO(synk): PyTorch initHidden draws torch.randn per forward call; here h0
    # is a deterministic parameter for reproducibility.
    params["h0"] = jax.random.normal(k5, (num_layers, batch_size, hidden_size), jnp.float32)
    return params


# ---------------------- Pure-JAX reference (correctness) -------------------- #

def _gru_layer_ref(x_seq, w_ih, w_hh, b_ih, b_hh, h0):
    H = h0.shape[1]

    def step(h, x_t):
        gi = x_t @ w_ih + b_ih
        gh = h @ w_hh + b_hh
        r = jax.nn.sigmoid(gi[:, :H] + gh[:, :H])
        z = jax.nn.sigmoid(gi[:, H:2 * H] + gh[:, H:2 * H])
        n = jnp.tanh(gi[:, 2 * H:] + r * gh[:, 2 * H:])
        h_new = (1.0 - z) * n + z * h
        return h_new, h_new

    _, ys = lax.scan(step, h0, x_seq)
    return ys


def _forward_ref(params, motion_sequence, lengths):
    bs, nj, nf, T = motion_sequence.shape
    seq = jnp.transpose(motion_sequence.reshape(bs, nj * nf, T), (2, 0, 1)).astype(jnp.float32)
    layer_in = seq
    for l in range(HIDDEN_LAYER):
        layer_in = _gru_layer_ref(layer_in,
                                  params["w_ih"][l], params["w_hh"][l],
                                  params["b_ih"][l], params["b_hh"][l],
                                  params["h0"][l])
    out = layer_in[lengths - 1, jnp.arange(bs)]                    # (B, H)
    lin1 = jnp.tanh(out @ params["w1"] + params["b1"])
    return lin1 @ params["w2"] + params["b2"]


if __name__ == "__main__":
    key = jax.random.PRNGKey(0)
    k_data, k_param = jax.random.split(key)

    bs, num_frames = 2, 8
    x = jax.random.normal(k_data, (bs, NJOINTS, NFEATS, num_frames), jnp.float32)
    lengths = jnp.array([num_frames, 5], dtype=jnp.int32)

    params = init_params(k_param, INPUT_SIZE, HIDDEN_SIZE, HIDDEN_LAYER,
                         LIN1_SIZE, OUTPUT_SIZE, bs)

    out = motion_discriminator_forward(params, x, lengths)
    out = jax.block_until_ready(out)

    ref = _forward_ref(params, x, lengths)
    assert out.shape == (bs, OUTPUT_SIZE), out.shape
    assert jnp.allclose(out, ref, atol=1e-4, rtol=1e-4), (out, ref)
    print("KERNEL_OK")
</pallas_src>

<mosaic_0001>
module attributes {stable_mosaic.version = 11 : i64} {
  func.func @fused_motion_discriminator_kernel(%arg0: memref<8x1xi32, #tpu.memory_space<vmem>>, %arg1: memref<64x18xf32, #tpu.memory_space<vmem>>, %arg2: memref<18x96xf32, #tpu.memory_space<vmem>>, %arg3: memref<1x96xf32, #tpu.memory_space<vmem>>, %arg4: memref<3x32x32xf32, #tpu.memory_space<vmem>>, %arg5: memref<1x32xf32, #tpu.memory_space<vmem>>, %arg6: memref<8x32xf32, #tpu.memory_space<vmem>>, %arg7: memref<32x96xf32, #tpu.memory_space<vmem>>, %arg8: memref<1x96xf32, #tpu.memory_space<vmem>>, %arg9: memref<3x32x32xf32, #tpu.memory_space<vmem>>, %arg10: memref<1x32xf32, #tpu.memory_space<vmem>>, %arg11: memref<8x32xf32, #tpu.memory_space<vmem>>, %arg12: memref<32x30xf32, #tpu.memory_space<vmem>>, %arg13: memref<1x30xf32, #tpu.memory_space<vmem>>, %arg14: memref<30x12xf32, #tpu.memory_space<vmem>>, %arg15: memref<1x12xf32, #tpu.memory_space<vmem>>, %arg16: memref<8x12xf32, #tpu.memory_space<vmem>>) attributes {dimension_semantics = [], scalar_prefetch = 0 : i64, scratch_operands = 0 : i64, tpu.core_type = #tpu.core_type<tc>} {
    %c0 = arith.constant 0 : index
    %c0_0 = arith.constant 0 : index
    %0 = vector.load %arg1[%c0, %c0_0] : memref<64x18xf32, #tpu.memory_space<vmem>>, vector<64x18xf32>
    %c0_1 = arith.constant 0 : index
    %c0_2 = arith.constant 0 : index
    %1 = vector.load %arg2[%c0_1, %c0_2] : memref<18x96xf32, #tpu.memory_space<vmem>>, vector<18x96xf32>
    %cst = arith.constant dense<0.000000e+00> : vector<64x96xf32>
    %2 = tpu.matmul %0, %1, %cst {dimension_numbers = #tpu.dot_dimension_numbers<[1], [0], [0], [1], [0, 0, 1, 1], [], []>} : vector<64x18xf32>, vector<18x96xf32>, vector<64x96xf32> -> vector<64x96xf32>
    %c0_3 = arith.constant 0 : index
    %c0_4 = arith.constant 0 : index
    %3 = vector.load %arg3[%c0_3, %c0_4] : memref<1x96xf32, #tpu.memory_space<vmem>>, vector<1x96xf32>
    %4 = vector.broadcast %3 : vector<1x96xf32> to vector<64x96xf32>
    %5 = arith.addf %2, %4 : vector<64x96xf32>
    %6 = vector.extract_strided_slice %5 {offsets = [0, 0], sizes = [64, 32], strides = [1, 1]} : vector<64x96xf32> to vector<64x32xf32>
    %7 = vector.extract_strided_slice %5 {offsets = [0, 32], sizes = [64, 32], strides = [1, 1]} : vector<64x96xf32> to vector<64x32xf32>
    %8 = vector.extract_strided_slice %5 {offsets = [0, 64], sizes = [64, 32], strides = [1, 1]} : vector<64x96xf32> to vector<64x32xf32>
    %c0_5 = arith.constant 0 : index
    %c0_6 = arith.constant 0 : index
    %9 = vector.load %arg5[%c0_5, %c0_6] : memref<1x32xf32, #tpu.memory_space<vmem>>, vector<1x32xf32>
    %10 = vector.shape_cast %9 : vector<1x32xf32> to vector<1x32xf32>
    %11 = vector.broadcast %10 : vector<1x32xf32> to vector<8x32xf32>
    %c0_7 = arith.constant 0 : index
    %c0_8 = arith.constant 0 : index
    %c0_9 = arith.constant 0 : index
    %12 = vector.load %arg4[%c0_7, %c0_8, %c0_9] : memref<3x32x32xf32, #tpu.memory_space<vmem>>, vector<1x32x32xf32>
    %13 = vector.shape_cast %12 : vector<1x32x32xf32> to vector<32x32xf32>
    %c1 = arith.constant 1 : index
    %c0_10 = arith.constant 0 : index
    %c0_11 = arith.constant 0 : index
    %14 = vector.load %arg4[%c1, %c0_10, %c0_11] : memref<3x32x32xf32, #tpu.memory_space<vmem>>, vector<1x32x32xf32>
    %15 = vector.shape_cast %14 : vector<1x32x32xf32> to vector<32x32xf32>
    %c2 = arith.constant 2 : index
    %c0_12 = arith.constant 0 : index
    %c0_13 = arith.constant 0 : index
    %16 = vector.load %arg4[%c2, %c0_12, %c0_13] : memref<3x32x32xf32, #tpu.memory_space<vmem>>, vector<1x32x32xf32>
    %17 = vector.shape_cast %16 : vector<1x32x32xf32> to vector<32x32xf32>
    %c0_14 = arith.constant 0 : index
    %c0_15 = arith.constant 0 : index
    %18 = vector.load %arg6[%c0_14, %c0_15] : memref<8x32xf32, #tpu.memory_space<vmem>>, vector<8x32xf32>
    %19 = vector.extract_strided_slice %6 {offsets = [0, 0], sizes = [8, 32], strides = [1, 1]} : vector<64x32xf32> to vector<8x32xf32>
    %20 = vector.extract_strided_slice %7 {offsets = [0, 0], sizes = [8, 32], strides = [1, 1]} : vector<64x32xf32> to vector<8x32xf32>
    %21 = vector.extract_strided_slice %8 {offsets = [0, 0], sizes = [8, 32], strides = [1, 1]} : vector<64x32xf32> to vector<8x32xf32>
    %cst_16 = arith.constant dense<0.000000e+00> : vector<8x32xf32>
    %22 = tpu.matmul %18, %13, %cst_16 {dimension_numbers = #tpu.dot_dimension_numbers<[1], [0], [0], [1], [0, 0, 1, 1], [], []>} : vector<8x32xf32>, vector<32x32xf32>, vector<8x32xf32> -> vector<8x32xf32>
    %cst_17 = arith.constant dense<0.000000e+00> : vector<8x32xf32>
    %23 = tpu.matmul %18, %15, %cst_17 {dimension_numbers = #tpu.dot_dimension_numbers<[1], [0], [0], [1], [0, 0, 1, 1], [], []>} : vector<8x32xf32>, vector<32x32xf32>, vector<8x32xf32> -> vector<8x32xf32>
    %cst_18 = arith.constant dense<0.000000e+00> : vector<8x32xf32>
    %24 = tpu.matmul %18, %17, %cst_18 {dimension_numbers = #tpu.dot_dimension_numbers<[1], [0], [0], [1], [0, 0, 1, 1], [], []>} : vector<8x32xf32>, vector<32x32xf32>, vector<8x32xf32> -> vector<8x32xf32>
    %25 = arith.addf %19, %22 : vector<8x32xf32>
    %26 = arith.negf %25 : vector<8x32xf32>
    %27 = math.exp %26 : vector<8x32xf32>
    %cst_19 = arith.constant 1.000000e+00 : f32
    %28 = vector.broadcast %cst_19 : f32 to vector<8x32xf32>
    %29 = arith.addf %28, %27 : vector<8x32xf32>
    %30 = arith.divf %28, %29 : vector<8x32xf32>
    %31 = arith.addf %20, %23 : vector<8x32xf32>
    %32 = arith.negf %31 : vector<8x32xf32>
    %33 = math.exp %32 : vector<8x32xf32>
    %cst_20 = arith.constant 1.000000e+00 : f32
    %34 = vector.broadcast %cst_20 : f32 to vector<8x32xf32>
    %35 = arith.addf %34, %33 : vector<8x32xf32>
    %36 = arith.divf %34, %35 : vector<8x32xf32>
    %37 = arith.addf %24, %11 : vector<8x32xf32>
    %38 = arith.mulf %30, %37 : vector<8x32xf32>
    %39 = arith.addf %21, %38 : vector<8x32xf32>
    %40 = math.tanh %39 : vector<8x32xf32>
    %cst_21 = arith.constant 1.000000e+00 : f32
    %41 = vector.broadcast %cst_21 : f32 to vector<8x32xf32>
    %42 = arith.subf %41, %36 : vector<8x32xf32>
    %43 = arith.mulf %42, %40 : vector<8x32xf32>
    %44 = arith.mulf %36, %18 : vector<8x32xf32>
    %45 = arith.addf %43, %44 : vector<8x32xf32>
    %46 = vector.extract_strided_slice %6 {offsets = [8, 0], sizes = [8, 32], strides = [1, 1]} : vector<64x32xf32> to vector<8x32xf32>
    %47 = vector.extract_strided_slice %7 {offsets = [8, 0], sizes = [8, 32], strides = [1, 1]} : vector<64x32xf32> to vector<8x32xf32>
    %48 = vector.extract_strided_slice %8 {offsets = [8, 0], sizes = [8, 32], strides = [1, 1]} : vector<64x32xf32> to vector<8x32xf32>
    %cst_22 = arith.constant dense<0.000000e+00> : vector<8x32xf32>
    %49 = tpu.matmul %45, %13, %cst_22 {dimension_numbers = #tpu.dot_dimension_numbers<[1], [0], [0], [1], [0, 0, 1, 1], [], []>} : vector<8x32xf32>, vector<32x32xf32>, vector<8x32xf32> -> vector<8x32xf32>
    %cst_23 = arith.constant dense<0.000000e+00> : vector<8x32xf32>
    %50 = tpu.matmul %45, %15, %cst_23 {dimension_numbers = #tpu.dot_dimension_numbers<[1], [0], [0], [1], [0, 0, 1, 1], [], []>} : vector<8x32xf32>, vector<32x32xf32>, vector<8x32xf32> -> vector<8x32xf32>
    %cst_24 = arith.constant dense<0.000000e+00> : vector<8x32xf32>
    %51 = tpu.matmul %45, %17, %cst_24 {dimension_numbers = #tpu.dot_dimension_numbers<[1], [0], [0], [1], [0, 0, 1, 1], [], []>} : vector<8x32xf32>, vector<32x32xf32>, vector<8x32xf32> -> vector<8x32xf32>
    %52 = arith.addf %46, %49 : vector<8x32xf32>
    %53 = arith.negf %52 : vector<8x32xf32>
    %54 = math.exp %53 : vector<8x32xf32>
    %cst_25 = arith.constant 1.000000e+00 : f32
    %55 = vector.broadcast %cst_25 : f32 to vector<8x32xf32>
    %56 = arith.addf %55, %54 : vector<8x32xf32>
    %57 = arith.divf %55, %56 : vector<8x32xf32>
    %58 = arith.addf %47, %50 : vector<8x32xf32>
    %59 = arith.negf %58 : vector<8x32xf32>
    %60 = math.exp %59 : vector<8x32xf32>
    %cst_26 = arith.constant 1.000000e+00 : f32
    %61 = vector.broadcast %cst_26 : f32 to vector<8x32xf32>
    %62 = arith.addf %61, %60 : vector<8x32xf32>
    %63 = arith.divf %61, %62 : vector<8x32xf32>
    %64 = arith.addf %51, %11 : vector<8x32xf32>
    %65 = arith.mulf %57, %64 : vector<8x32xf32>
    %66 = arith.addf %48, %65 : vector<8x32xf32>
    %67 = math.tanh %66 : vector<8x32xf32>
    %cst_27 = arith.constant 1.000000e+00 : f32
    %68 = vector.broadcast %cst_27 : f32 to vector<8x32xf32>
    %69 = arith.subf %68, %63 : vector<8x32xf32>
    %70 = arith.mulf %69, %67 : vector<8x32xf32>
    %71 = arith.mulf %63, %45 : vector<8x32xf32>
    %72 = arith.addf %70, %71 : vector<8x32xf32>
    %73 = vector.extract_strided_slice %6 {offsets = [16, 0], sizes = [8, 32], strides = [1, 1]} : vector<64x32xf32> to vector<8x32xf32>
    %74 = vector.extract_strided_slice %7 {offsets = [16, 0], sizes = [8, 32], strides = [1, 1]} : vector<64x32xf32> to vector<8x32xf32>
    %75 = vector.extract_strided_slice %8 {offsets = [16, 0], sizes = [8, 32], strides = [1, 1]} : vector<64x32xf32> to vector<8x32xf32>
    %cst_28 = arith.constant dense<0.000000e+00> : vector<8x32xf32>
    %76 = tpu.matmul %72, %13, %cst_28 {dimension_numbers = #tpu.dot_dimension_numbers<[1], [0], [0], [1], [0, 0, 1, 1], [], []>} : vector<8x32xf32>, vector<32x32xf32>, vector<8x32xf32> -> vector<8x32xf32>
    %cst_29 = arith.constant dense<0.000000e+00> : vector<8x32xf32>
    %77 = tpu.matmul %72, %15, %cst_29 {dimension_numbers = #tpu.dot_dimension_numbers<[1], [0], [0], [1], [0, 0, 1, 1], [], []>} : vector<8x32xf32>, vector<32x32xf32>, vector<8x32xf32> -> vector<8x32xf32>
    %cst_30 = arith.constant dense<0.000000e+00> : vector<8x32xf32>
    %78 = tpu.matmul %72, %17, %cst_30 {dimension_numbers = #tpu.dot_dimension_numbers<[1], [0], [0], [1], [0, 0, 1, 1], [], []>} : vector<8x32xf32>, vector<32x32xf32>, vector<8x32xf32> -> vector<8x32xf32>
    %79 = arith.addf %73, %76 : vector<8x32xf32>
    %80 = arith.negf %79 : vector<8x32xf32>
    %81 = math.exp %80 : vector<8x32xf32>
    %cst_31 = arith.constant 1.000000e+00 : f32
    %82 = vector.broadcast %cst_31 : f32 to vector<8x32xf32>
    %83 = arith.addf %82, %81 : vector<8x32xf32>
    %84 = arith.divf %82, %83 : vector<8x32xf32>
    %85 = arith.addf %74, %77 : vector<8x32xf32>
    %86 = arith.negf %85 : vector<8x32xf32>
    %87 = math.exp %86 : vector<8x32xf32>
    %cst_32 = arith.constant 1.000000e+00 : f32
    %88 = vector.broadcast %cst_32 : f32 to vector<8x32xf32>
    %89 = arith.addf %88, %87 : vector<8x32xf32>
    %90 = arith.divf %88, %89 : vector<8x32xf32>
    %91 = arith.addf %78, %11 : vector<8x32xf32>
    %92 = arith.mulf %84, %91 : vector<8x32xf32>
    %93 = arith.addf %75, %92 : vector<8x32xf32>
    %94 = math.tanh %93 : vector<8x32xf32>
    %cst_33 = arith.constant 1.000000e+00 : f32
    %95 = vector.broadcast %cst_33 : f32 to vector<8x32xf32>
    %96 = arith.subf %95, %90 : vector<8x32xf32>
    %97 = arith.mulf %96, %94 : vector<8x32xf32>
    %98 = arith.mulf %90, %72 : vector<8x32xf32>
    %99 = arith.addf %97, %98 : vector<8x32xf32>
    %100 = vector.extract_strided_slice %6 {offsets = [24, 0], sizes = [8, 32], strides = [1, 1]} : vector<64x32xf32> to vector<8x32xf32>
    %101 = vector.extract_strided_slice %7 {offsets = [24, 0], sizes = [8, 32], strides = [1, 1]} : vector<64x32xf32> to vector<8x32xf32>
    %102 = vector.extract_strided_slice %8 {offsets = [24, 0], sizes = [8, 32], strides = [1, 1]} : vector<64x32xf32> to vector<8x32xf32>
    %cst_34 = arith.constant dense<0.000000e+00> : vector<8x32xf32>
    %103 = tpu.matmul %99, %13, %cst_34 {dimension_numbers = #tpu.dot_dimension_numbers<[1], [0], [0], [1], [0, 0, 1, 1], [], []>} : vector<8x32xf32>, vector<32x32xf32>, vector<8x32xf32> -> vector<8x32xf32>
    %cst_35 = arith.constant dense<0.000000e+00> : vector<8x32xf32>
    %104 = tpu.matmul %99, %15, %cst_35 {dimension_numbers = #tpu.dot_dimension_numbers<[1], [0], [0], [1], [0, 0, 1, 1], [], []>} : vector<8x32xf32>, vector<32x32xf32>, vector<8x32xf32> -> vector<8x32xf32>
    %cst_36 = arith.constant dense<0.000000e+00> : vector<8x32xf32>
    %105 = tpu.matmul %99, %17, %cst_36 {dimension_numbers = #tpu.dot_dimension_numbers<[1], [0], [0], [1], [0, 0, 1, 1], [], []>} : vector<8x32xf32>, vector<32x32xf32>, vector<8x32xf32> -> vector<8x32xf32>
    %106 = arith.addf %100, %103 : vector<8x32xf32>
    %107 = arith.negf %106 : vector<8x32xf32>
    %108 = math.exp %107 : vector<8x32xf32>
    %cst_37 = arith.constant 1.000000e+00 : f32
    %109 = vector.broadcast %cst_37 : f32 to vector<8x32xf32>
    %110 = arith.addf %109, %108 : vector<8x32xf32>
    %111 = arith.divf %109, %110 : vector<8x32xf32>
    %112 = arith.addf %101, %104 : vector<8x32xf32>
    %113 = arith.negf %112 : vector<8x32xf32>
    %114 = math.exp %113 : vector<8x32xf32>
    %cst_38 = arith.constant 1.000000e+00 : f32
    %115 = vector.broadcast %cst_38 : f32 to vector<8x32xf32>
    %116 = arith.addf %115, %114 : vector<8x32xf32>
    %117 = arith.divf %115, %116 : vector<8x32xf32>
    %118 = arith.addf %105, %11 : vector<8x32xf32>
    %119 = arith.mulf %111, %118 : vector<8x32xf32>
    %120 = arith.addf %102, %119 : vector<8x32xf32>
    %121 = math.tanh %120 : vector<8x32xf32>
    %cst_39 = arith.constant 1.000000e+00 : f32
    %122 = vector.broadcast %cst_39 : f32 to vector<8x32xf32>
    %123 = arith.subf %122, %117 : vector<8x32xf32>
    %124 = arith.mulf %123, %121 : vector<8x32xf32>
    %125 = arith.mulf %117, %99 : vector<8x32xf32>
    %126 = arith.addf %124, %125 : vector<8x32xf32>
    %127 = vector.extract_strided_slice %6 {offsets = [32, 0], sizes = [8, 32], strides = [1, 1]} : vector<64x32xf32> to vector<8x32xf32>
    %128 = vector.extract_strided_slice %7 {offsets = [32, 0], sizes = [8, 32], strides = [1, 1]} : vector<64x32xf32> to vector<8x32xf32>
    %129 = vector.extract_strided_slice %8 {offsets = [32, 0], sizes = [8, 32], strides = [1, 1]} : vector<64x32xf32> to vector<8x32xf32>
    %cst_40 = arith.constant dense<0.000000e+00> : vector<8x32xf32>
    %130 = tpu.matmul %126, %13, %cst_40 {dimension_numbers = #tpu.dot_dimension_numbers<[1], [0], [0], [1], [0, 0, 1, 1], [], []>} : vector<8x32xf32>, vector<32x32xf32>, vector<8x32xf32> -> vector<8x32xf32>
    %cst_41 = arith.constant dense<0.000000e+00> : vector<8x32xf32>
    %131 = tpu.matmul %126, %15, %cst_41 {dimension_numbers = #tpu.dot_dimension_numbers<[1], [0], [0], [1], [0, 0, 1, 1], [], []>} : vector<8x32xf32>, vector<32x32xf32>, vector<8x32xf32> -> vector<8x32xf32>
    %cst_42 = arith.constant dense<0.000000e+00> : vector<8x32xf32>
    %132 = tpu.matmul %126, %17, %cst_42 {dimension_numbers = #tpu.dot_dimension_numbers<[1], [0], [0], [1], [0, 0, 1, 1], [], []>} : vector<8x32xf32>, vector<32x32xf32>, vector<8x32xf32> -> vector<8x32xf32>
    %133 = arith.addf %127, %130 : vector<8x32xf32>
    %134 = arith.negf %133 : vector<8x32xf32>
    %135 = math.exp %134 : vector<8x32xf32>
    %cst_43 = arith.constant 1.000000e+00 : f32
    %136 = vector.broadcast %cst_43 : f32 to vector<8x32xf32>
    %137 = arith.addf %136, %135 : vector<8x32xf32>
    %138 = arith.divf %136, %137 : vector<8x32xf32>
    %139 = arith.addf %128, %131 : vector<8x32xf32>
    %140 = arith.negf %139 : vector<8x32xf32>
    %141 = math.exp %140 : vector<8x32xf32>
    %cst_44 = arith.constant 1.000000e+00 : f32
    %142 = vector.broadcast %cst_44 : f32 to vector<8x32xf32>
    %143 = arith.addf %142, %141 : vector<8x32xf32>
    %144 = arith.divf %142, %143 : vector<8x32xf32>
    %145 = arith.addf %132, %11 : vector<8x32xf32>
    %146 = arith.mulf %138, %145 : vector<8x32xf32>
    %147 = arith.addf %129, %146 : vector<8x32xf32>
    %148 = math.tanh %147 : vector<8x32xf32>
    %cst_45 = arith.constant 1.000000e+00 : f32
    %149 = vector.broadcast %cst_45 : f32 to vector<8x32xf32>
    %150 = arith.subf %149, %144 : vector<8x32xf32>
    %151 = arith.mulf %150, %148 : vector<8x32xf32>
    %152 = arith.mulf %144, %126 : vector<8x32xf32>
    %153 = arith.addf %151, %152 : vector<8x32xf32>
    %154 = vector.extract_strided_slice %6 {offsets = [40, 0], sizes = [8, 32], strides = [1, 1]} : vector<64x32xf32> to vector<8x32xf32>
    %155 = vector.extract_strided_slice %7 {offsets = [40, 0], sizes = [8, 32], strides = [1, 1]} : vector<64x32xf32> to vector<8x32xf32>
    %156 = vector.extract_strided_slice %8 {offsets = [40, 0], sizes = [8, 32], strides = [1, 1]} : vector<64x32xf32> to vector<8x32xf32>
    %cst_46 = arith.constant dense<0.000000e+00> : vector<8x32xf32>
    %157 = tpu.matmul %153, %13, %cst_46 {dimension_numbers = #tpu.dot_dimension_numbers<[1], [0], [0], [1], [0, 0, 1, 1], [], []>} : vector<8x32xf32>, vector<32x32xf32>, vector<8x32xf32> -> vector<8x32xf32>
    %cst_47 = arith.constant dense<0.000000e+00> : vector<8x32xf32>
    %158 = tpu.matmul %153, %15, %cst_47 {dimension_numbers = #tpu.dot_dimension_numbers<[1], [0], [0], [1], [0, 0, 1, 1], [], []>} : vector<8x32xf32>, vector<32x32xf32>, vector<8x32xf32> -> vector<8x32xf32>
    %cst_48 = arith.constant dense<0.000000e+00> : vector<8x32xf32>
    %159 = tpu.matmul %153, %17, %cst_48 {dimension_numbers = #tpu.dot_dimension_numbers<[1], [0], [0], [1], [0, 0, 1, 1], [], []>} : vector<8x32xf32>, vector<32x32xf32>, vector<8x32xf32> -> vector<8x32xf32>
    %160 = arith.addf %154, %157 : vector<8x32xf32>
    %161 = arith.negf %160 : vector<8x32xf32>
    %162 = math.exp %161 : vector<8x32xf32>
    %cst_49 = arith.constant 1.000000e+00 : f32
    %163 = vector.broadcast %cst_49 : f32 to vector<8x32xf32>
    %164 = arith.addf %163, %162 : vector<8x32xf32>
    %165 = arith.divf %163, %164 : vector<8x32xf32>
    %166 = arith.addf %155, %158 : vector<8x32xf32>
    %167 = arith.negf %166 : vector<8x32xf32>
    %168 = math.exp %167 : vector<8x32xf32>
    %cst_50 = arith.constant 1.000000e+00 : f32
    %169 = vector.broadcast %cst_50 : f32 to vector<8x32xf32>
    %170 = arith.addf %169, %168 : vector<8x32xf32>
    %171 = arith.divf %169, %170 : vector<8x32xf32>
    %172 = arith.addf %159, %11 : vector<8x32xf32>
    %173 = arith.mulf %165, %172 : vector<8x32xf32>
    %174 = arith.addf %156, %173 : vector<8x32xf32>
    %175 = math.tanh %174 : vector<8x32xf32>
    %cst_51 = arith.constant 1.000000e+00 : f32
    %176 = vector.broadcast %cst_51 : f32 to vector<8x32xf32>
    %177 = arith.subf %176, %171 : vector<8x32xf32>
    %178 = arith.mulf %177, %175 : vector<8x32xf32>
    %179 = arith.mulf %171, %153 : vector<8x32xf32>
    %180 = arith.addf %178, %179 : vector<8x32xf32>
    %181 = vector.extract_strided_slice %6 {offsets = [48, 0], sizes = [8, 32], strides = [1, 1]} : vector<64x32xf32> to vector<8x32xf32>
    %182 = vector.extract_strided_slice %7 {offsets = [48, 0], sizes = [8, 32], strides = [1, 1]} : vector<64x32xf32> to vector<8x32xf32>
    %183 = vector.extract_strided_slice %8 {offsets = [48, 0], sizes = [8, 32], strides = [1, 1]} : vector<64x32xf32> to vector<8x32xf32>
    %cst_52 = arith.constant dense<0.000000e+00> : vector<8x32xf32>
    %184 = tpu.matmul %180, %13, %cst_52 {dimension_numbers = #tpu.dot_dimension_numbers<[1], [0], [0], [1], [0, 0, 1, 1], [], []>} : vector<8x32xf32>, vector<32x32xf32>, vector<8x32xf32> -> vector<8x32xf32>
    %cst_53 = arith.constant dense<0.000000e+00> : vector<8x32xf32>
    %185 = tpu.matmul %180, %15, %cst_53 {dimension_numbers = #tpu.dot_dimension_numbers<[1], [0], [0], [1], [0, 0, 1, 1], [], []>} : vector<8x32xf32>, vector<32x32xf32>, vector<8x32xf32> -> vector<8x32xf32>
    %cst_54 = arith.constant dense<0.000000e+00> : vector<8x32xf32>
    %186 = tpu.matmul %180, %17, %cst_54 {dimension_numbers = #tpu.dot_dimension_numbers<[1], [0], [0], [1], [0, 0, 1, 1], [], []>} : vector<8x32xf32>, vector<32x32xf32>, vector<8x32xf32> -> vector<8x32xf32>
    %187 = arith.addf %181, %184 : vector<8x32xf32>
    %188 = arith.negf %187 : vector<8x32xf32>
    %189 = math.exp %188 : vector<8x32xf32>
    %cst_55 = arith.constant 1.000000e+00 : f32
    %190 = vector.broadcast %cst_55 : f32 to vector<8x32xf32>
    %191 = arith.addf %190, %189 : vector<8x32xf32>
    %192 = arith.divf %190, %191 : vector<8x32xf32>
    %193 = arith.addf %182, %185 : vector<8x32xf32>
    %194 = arith.negf %193 : vector<8x32xf32>
    %195 = math.exp %194 : vector<8x32xf32>
    %cst_56 = arith.constant 1.000000e+00 : f32
    %196 = vector.broadcast %cst_56 : f32 to vector<8x32xf32>
    %197 = arith.addf %196, %195 : vector<8x32xf32>
    %198 = arith.divf %196, %197 : vector<8x32xf32>
    %199 = arith.addf %186, %11 : vector<8x32xf32>
    %200 = arith.mulf %192, %199 : vector<8x32xf32>
    %201 = arith.addf %183, %200 : vector<8x32xf32>
    %202 = math.tanh %201 : vector<8x32xf32>
    %cst_57 = arith.constant 1.000000e+00 : f32
    %203 = vector.broadcast %cst_57 : f32 to vector<8x32xf32>
    %204 = arith.subf %203, %198 : vector<8x32xf32>
    %205 = arith.mulf %204, %202 : vector<8x32xf32>
    %206 = arith.mulf %198, %180 : vector<8x32xf32>
    %207 = arith.addf %205, %206 : vector<8x32xf32>
    %208 = vector.extract_strided_slice %6 {offsets = [56, 0], sizes = [8, 32], strides = [1, 1]} : vector<64x32xf32> to vector<8x32xf32>
    %209 = vector.extract_strided_slice %7 {offsets = [56, 0], sizes = [8, 32], strides = [1, 1]} : vector<64x32xf32> to vector<8x32xf32>
    %210 = vector.extract_strided_slice %8 {offsets = [56, 0], sizes = [8, 32], strides = [1, 1]} : vector<64x32xf32> to vector<8x32xf32>
    %cst_58 = arith.constant dense<0.000000e+00> : vector<8x32xf32>
    %211 = tpu.matmul %207, %13, %cst_58 {dimension_numbers = #tpu.dot_dimension_numbers<[1], [0], [0], [1], [0, 0, 1, 1], [], []>} : vector<8x32xf32>, vector<32x32xf32>, vector<8x32xf32> -> vector<8x32xf32>
    %cst_59 = arith.constant dense<0.000000e+00> : vector<8x32xf32>
    %212 = tpu.matmul %207, %15, %cst_59 {dimension_numbers = #tpu.dot_dimension_numbers<[1], [0], [0], [1], [0, 0, 1, 1], [], []>} : vector<8x32xf32>, vector<32x32xf32>, vector<8x32xf32> -> vector<8x32xf32>
    %cst_60 = arith.constant dense<0.000000e+00> : vector<8x32xf32>
    %213 = tpu.matmul %207, %17, %cst_60 {dimension_numbers = #tpu.dot_dimension_numbers<[1], [0], [0], [1], [0, 0, 1, 1], [], []>} : vector<8x32xf32>, vector<32x32xf32>, vector<8x32xf32> -> vector<8x32xf32>
    %214 = arith.addf %208, %211 : vector<8x32xf32>
    %215 = arith.negf %214 : vector<8x32xf32>
    %216 = math.exp %215 : vector<8x32xf32>
    %cst_61 = arith.constant 1.000000e+00 : f32
    %217 = vector.broadcast %cst_61 : f32 to vector<8x32xf32>
    %218 = arith.addf %217, %216 : vector<8x32xf32>
    %219 = arith.divf %217, %218 : vector<8x32xf32>
    %220 = arith.addf %209, %212 : vector<8x32xf32>
    %221 = arith.negf %220 : vector<8x32xf32>
    %222 = math.exp %221 : vector<8x32xf32>
    %cst_62 = arith.constant 1.000000e+00 : f32
    %223 = vector.broadcast %cst_62 : f32 to vector<8x32xf32>
    %224 = arith.addf %223, %222 : vector<8x32xf32>
    %225 = arith.divf %223, %224 : vector<8x32xf32>
    %226 = arith.addf %213, %11 : vector<8x32xf32>
    %227 = arith.mulf %219, %226 : vector<8x32xf32>
    %228 = arith.addf %210, %227 : vector<8x32xf32>
    %229 = math.tanh %228 : vector<8x32xf32>
    %cst_63 = arith.constant 1.000000e+00 : f32
    %230 = vector.broadcast %cst_63 : f32 to vector<8x32xf32>
    %231 = arith.subf %230, %225 : vector<8x32xf32>
    %232 = arith.mulf %231, %229 : vector<8x32xf32>
    %233 = arith.mulf %225, %207 : vector<8x32xf32>
    %234 = arith.addf %232, %233 : vector<8x32xf32>
    %235 = tpu.concatenate %45, %72, %99, %126, %153, %180, %207, %234 in 0 : vector<8x32xf32>, vector<8x32xf32>, vector<8x32xf32>, vector<8x32xf32>, vector<8x32xf32>, vector<8x32xf32>, vector<8x32xf32>, vector<8x32xf32> -> vector<64x32xf32>
    %c0_64 = arith.constant 0 : index
    %c0_65 = arith.constant 0 : index
    %236 = vector.load %arg7[%c0_64, %c0_65] : memref<32x96xf32, #tpu.memory_space<vmem>>, vector<32x96xf32>
    %cst_66 = arith.constant dense<0.000000e+00> : vector<64x96xf32>
    %237 = tpu.matmul %235, %236, %cst_66 {dimension_numbers = #tpu.dot_dimension_numbers<[1], [0], [0], [1], [0, 0, 1, 1], [], []>} : vector<64x32xf32>, vector<32x96xf32>, vector<64x96xf32> -> vector<64x96xf32>
    %c0_67 = arith.constant 0 : index
    %c0_68 = arith.constant 0 : index
    %238 = vector.load %arg8[%c0_67, %c0_68] : memref<1x96xf32, #tpu.memory_space<vmem>>, vector<1x96xf32>
    %239 = vector.broadcast %238 : vector<1x96xf32> to vector<64x96xf32>
    %240 = arith.addf %237, %239 : vector<64x96xf32>
    %241 = vector.extract_strided_slice %240 {offsets = [0, 0], sizes = [64, 32], strides = [1, 1]} : vector<64x96xf32> to vector<64x32xf32>
    %242 = vector.extract_strided_slice %240 {offsets = [0, 32], sizes = [64, 32], strides = [1, 1]} : vector<64x96xf32> to vector<64x32xf32>
    %243 = vector.extract_strided_slice %240 {offsets = [0, 64], sizes = [64, 32], strides = [1, 1]} : vector<64x96xf32> to vector<64x32xf32>
    %c0_69 = arith.constant 0 : index
    %c0_70 = arith.constant 0 : index
    %244 = vector.load %arg10[%c0_69, %c0_70] : memref<1x32xf32, #tpu.memory_space<vmem>>, vector<1x32xf32>
    %245 = vector.shape_cast %244 : vector<1x32xf32> to vector<1x32xf32>
    %246 = vector.broadcast %245 : vector<1x32xf32> to vector<8x32xf32>
    %c0_71 = arith.constant 0 : index
    %c0_72 = arith.constant 0 : index
    %247 = vector.load %arg0[%c0_71, %c0_72] : memref<8x1xi32, #tpu.memory_space<vmem>>, vector<8x1xi32>
    %248 = vector.shape_cast %247 : vector<8x1xi32> to vector<8x1xi32>
    %249 = vector.broadcast %248 : vector<8x1xi32> to vector<8x32xi32>
    %c0_73 = arith.constant 0 : index
    %c0_74 = arith.constant 0 : index
    %c0_75 = arith.constant 0 : index
    %250 = vector.load %arg9[%c0_73, %c0_74, %c0_75] : memref<3x32x32xf32, #tpu.memory_space<vmem>>, vector<1x32x32xf32>
    %251 = vector.shape_cast %250 : vector<1x32x32xf32> to vector<32x32xf32>
    %c1_76 = arith.constant 1 : index
    %c0_77 = arith.constant 0 : index
    %c0_78 = arith.constant 0 : index
    %252 = vector.load %arg9[%c1_76, %c0_77, %c0_78] : memref<3x32x32xf32, #tpu.memory_space<vmem>>, vector<1x32x32xf32>
    %253 = vector.shape_cast %252 : vector<1x32x32xf32> to vector<32x32xf32>
    %c2_79 = arith.constant 2 : index
    %c0_80 = arith.constant 0 : index
    %c0_81 = arith.constant 0 : index
    %254 = vector.load %arg9[%c2_79, %c0_80, %c0_81] : memref<3x32x32xf32, #tpu.memory_space<vmem>>, vector<1x32x32xf32>
    %255 = vector.shape_cast %254 : vector<1x32x32xf32> to vector<32x32xf32>
    %c0_82 = arith.constant 0 : index
    %c0_83 = arith.constant 0 : index
    %256 = vector.load %arg11[%c0_82, %c0_83] : memref<8x32xf32, #tpu.memory_space<vmem>>, vector<8x32xf32>
    %cst_84 = arith.constant 0.000000e+00 : f32
    %257 = vector.broadcast %cst_84 : f32 to vector<8x32xf32>
    %258 = vector.extract_strided_slice %241 {offsets = [0, 0], sizes = [8, 32], strides = [1, 1]} : vector<64x32xf32> to vector<8x32xf32>
    %259 = vector.extract_strided_slice %242 {offsets = [0, 0], sizes = [8, 32], strides = [1, 1]} : vector<64x32xf32> to vector<8x32xf32>
    %260 = vector.extract_strided_slice %243 {offsets = [0, 0], sizes = [8, 32], strides = [1, 1]} : vector<64x32xf32> to vector<8x32xf32>
    %cst_85 = arith.constant dense<0.000000e+00> : vector<8x32xf32>
    %261 = tpu.matmul %256, %251, %cst_85 {dimension_numbers = #tpu.dot_dimension_numbers<[1], [0], [0], [1], [0, 0, 1, 1], [], []>} : vector<8x32xf32>, vector<32x32xf32>, vector<8x32xf32> -> vector<8x32xf32>
    %cst_86 = arith.constant dense<0.000000e+00> : vector<8x32xf32>
    %262 = tpu.matmul %256, %253, %cst_86 {dimension_numbers = #tpu.dot_dimension_numbers<[1], [0], [0], [1], [0, 0, 1, 1], [], []>} : vector<8x32xf32>, vector<32x32xf32>, vector<8x32xf32> -> vector<8x32xf32>
    %cst_87 = arith.constant dense<0.000000e+00> : vector<8x32xf32>
    %263 = tpu.matmul %256, %255, %cst_87 {dimension_numbers = #tpu.dot_dimension_numbers<[1], [0], [0], [1], [0, 0, 1, 1], [], []>} : vector<8x32xf32>, vector<32x32xf32>, vector<8x32xf32> -> vector<8x32xf32>
    %264 = arith.addf %258, %261 : vector<8x32xf32>
    %265 = arith.negf %264 : vector<8x32xf32>
    %266 = math.exp %265 : vector<8x32xf32>
    %cst_88 = arith.constant 1.000000e+00 : f32
    %267 = vector.broadcast %cst_88 : f32 to vector<8x32xf32>
    %268 = arith.addf %267, %266 : vector<8x32xf32>
    %269 = arith.divf %267, %268 : vector<8x32xf32>
    %270 = arith.addf %259, %262 : vector<8x32xf32>
    %271 = arith.negf %270 : vector<8x32xf32>
    %272 = math.exp %271 : vector<8x32xf32>
    %cst_89 = arith.constant 1.000000e+00 : f32
    %273 = vector.broadcast %cst_89 : f32 to vector<8x32xf32>
    %274 = arith.addf %273, %272 : vector<8x32xf32>
    %275 = arith.divf %273, %274 : vector<8x32xf32>
    %276 = arith.addf %263, %246 : vector<8x32xf32>
    %277 = arith.mulf %269, %276 : vector<8x32xf32>
    %278 = arith.addf %260, %277 : vector<8x32xf32>
    %279 = math.tanh %278 : vector<8x32xf32>
    %cst_90 = arith.constant 1.000000e+00 : f32
    %280 = vector.broadcast %cst_90 : f32 to vector<8x32xf32>
    %281 = arith.subf %280, %275 : vector<8x32xf32>
    %282 = arith.mulf %281, %279 : vector<8x32xf32>
    %283 = arith.mulf %275, %256 : vector<8x32xf32>
    %284 = arith.addf %282, %283 : vector<8x32xf32>
    %c1_i32 = arith.constant 1 : i32
    %285 = vector.broadcast %c1_i32 : i32 to vector<8x32xi32>
    %286 = arith.cmpi eq, %249, %285 : vector<8x32xi32>
    %287 = arith.select %286, %284, %257 : vector<8x32xi1>, vector<8x32xf32>
    %288 = vector.extract_strided_slice %241 {offsets = [8, 0], sizes = [8, 32], strides = [1, 1]} : vector<64x32xf32> to vector<8x32xf32>
    %289 = vector.extract_strided_slice %242 {offsets = [8, 0], sizes = [8, 32], strides = [1, 1]} : vector<64x32xf32> to vector<8x32xf32>
    %290 = vector.extract_strided_slice %243 {offsets = [8, 0], sizes = [8, 32], strides = [1, 1]} : vector<64x32xf32> to vector<8x32xf32>
    %cst_91 = arith.constant dense<0.000000e+00> : vector<8x32xf32>
    %291 = tpu.matmul %284, %251, %cst_91 {dimension_numbers = #tpu.dot_dimension_numbers<[1], [0], [0], [1], [0, 0, 1, 1], [], []>} : vector<8x32xf32>, vector<32x32xf32>, vector<8x32xf32> -> vector<8x32xf32>
    %cst_92 = arith.constant dense<0.000000e+00> : vector<8x32xf32>
    %292 = tpu.matmul %284, %253, %cst_92 {dimension_numbers = #tpu.dot_dimension_numbers<[1], [0], [0], [1], [0, 0, 1, 1], [], []>} : vector<8x32xf32>, vector<32x32xf32>, vector<8x32xf32> -> vector<8x32xf32>
    %cst_93 = arith.constant dense<0.000000e+00> : vector<8x32xf32>
    %293 = tpu.matmul %284, %255, %cst_93 {dimension_numbers = #tpu.dot_dimension_numbers<[1], [0], [0], [1], [0, 0, 1, 1], [], []>} : vector<8x32xf32>, vector<32x32xf32>, vector<8x32xf32> -> vector<8x32xf32>
    %294 = arith.addf %288, %291 : vector<8x32xf32>
    %295 = arith.negf %294 : vector<8x32xf32>
    %296 = math.exp %295 : vector<8x32xf32>
    %cst_94 = arith.constant 1.000000e+00 : f32
    %297 = vector.broadcast %cst_94 : f32 to vector<8x32xf32>
    %298 = arith.addf %297, %296 : vector<8x32xf32>
    %299 = arith.divf %297, %298 : vector<8x32xf32>
    %300 = arith.addf %289, %292 : vector<8x32xf32>
    %301 = arith.negf %300 : vector<8x32xf32>
    %302 = math.exp %301 : vector<8x32xf32>
    %cst_95 = arith.constant 1.000000e+00 : f32
    %303 = vector.broadcast %cst_95 : f32 to vector<8x32xf32>
    %304 = arith.addf %303, %302 : vector<8x32xf32>
    %305 = arith.divf %303, %304 : vector<8x32xf32>
    %306 = arith.addf %293, %246 : vector<8x32xf32>
    %307 = arith.mulf %299, %306 : vector<8x32xf32>
    %308 = arith.addf %290, %307 : vector<8x32xf32>
    %309 = math.tanh %308 : vector<8x32xf32>
    %cst_96 = arith.constant 1.000000e+00 : f32
    %310 = vector.broadcast %cst_96 : f32 to vector<8x32xf32>
    %311 = arith.subf %310, %305 : vector<8x32xf32>
    %312 = arith.mulf %311, %309 : vector<8x32xf32>
    %313 = arith.mulf %305, %284 : vector<8x32xf32>
    %314 = arith.addf %312, %313 : vector<8x32xf32>
    %c2_i32 = arith.constant 2 : i32
    %315 = vector.broadcast %c2_i32 : i32 to vector<8x32xi32>
    %316 = arith.cmpi eq, %249, %315 : vector<8x32xi32>
    %317 = arith.select %316, %314, %287 : vector<8x32xi1>, vector<8x32xf32>
    %318 = vector.extract_strided_slice %241 {offsets = [16, 0], sizes = [8, 32], strides = [1, 1]} : vector<64x32xf32> to vector<8x32xf32>
    %319 = vector.extract_strided_slice %242 {offsets = [16, 0], sizes = [8, 32], strides = [1, 1]} : vector<64x32xf32> to vector<8x32xf32>
    %320 = vector.extract_strided_slice %243 {offsets = [16, 0], sizes = [8, 32], strides = [1, 1]} : vector<64x32xf32> to vector<8x32xf32>
    %cst_97 = arith.constant dense<0.000000e+00> : vector<8x32xf32>
    %321 = tpu.matmul %314, %251, %cst_97 {dimension_numbers = #tpu.dot_dimension_numbers<[1], [0], [0], [1], [0, 0, 1, 1], [], []>} : vector<8x32xf32>, vector<32x32xf32>, vector<8x32xf32> -> vector<8x32xf32>
    %cst_98 = arith.constant dense<0.000000e+00> : vector<8x32xf32>
    %322 = tpu.matmul %314, %253, %cst_98 {dimension_numbers = #tpu.dot_dimension_numbers<[1], [0], [0], [1], [0, 0, 1, 1], [], []>} : vector<8x32xf32>, vector<32x32xf32>, vector<8x32xf32> -> vector<8x32xf32>
    %cst_99 = arith.constant dense<0.000000e+00> : vector<8x32xf32>
    %323 = tpu.matmul %314, %255, %cst_99 {dimension_numbers = #tpu.dot_dimension_numbers<[1], [0], [0], [1], [0, 0, 1, 1], [], []>} : vector<8x32xf32>, vector<32x32xf32>, vector<8x32xf32> -> vector<8x32xf32>
    %324 = arith.addf %318, %321 : vector<8x32xf32>
    %325 = arith.negf %324 : vector<8x32xf32>
    %326 = math.exp %325 : vector<8x32xf32>
    %cst_100 = arith.constant 1.000000e+00 : f32
    %327 = vector.broadcast %cst_100 : f32 to vector<8x32xf32>
    %328 = arith.addf %327, %326 : vector<8x32xf32>
    %329 = arith.divf %327, %328 : vector<8x32xf32>
    %330 = arith.addf %319, %322 : vector<8x32xf32>
    %331 = arith.negf %330 : vector<8x32xf32>
    %332 = math.exp %331 : vector<8x32xf32>
    %cst_101 = arith.constant 1.000000e+00 : f32
    %333 = vector.broadcast %cst_101 : f32 to vector<8x32xf32>
    %334 = arith.addf %333, %332 : vector<8x32xf32>
    %335 = arith.divf %333, %334 : vector<8x32xf32>
    %336 = arith.addf %323, %246 : vector<8x32xf32>
    %337 = arith.mulf %329, %336 : vector<8x32xf32>
    %338 = arith.addf %320, %337 : vector<8x32xf32>
    %339 = math.tanh %338 : vector<8x32xf32>
    %cst_102 = arith.constant 1.000000e+00 : f32
    %340 = vector.broadcast %cst_102 : f32 to vector<8x32xf32>
    %341 = arith.subf %340, %335 : vector<8x32xf32>
    %342 = arith.mulf %341, %339 : vector<8x32xf32>
    %343 = arith.mulf %335, %314 : vector<8x32xf32>
    %344 = arith.addf %342, %343 : vector<8x32xf32>
    %c3_i32 = arith.constant 3 : i32
    %345 = vector.broadcast %c3_i32 : i32 to vector<8x32xi32>
    %346 = arith.cmpi eq, %249, %345 : vector<8x32xi32>
    %347 = arith.select %346, %344, %317 : vector<8x32xi1>, vector<8x32xf32>
    %348 = vector.extract_strided_slice %241 {offsets = [24, 0], sizes = [8, 32], strides = [1, 1]} : vector<64x32xf32> to vector<8x32xf32>
    %349 = vector.extract_strided_slice %242 {offsets = [24, 0], sizes = [8, 32], strides = [1, 1]} : vector<64x32xf32> to vector<8x32xf32>
    %350 = vector.extract_strided_slice %243 {offsets = [24, 0], sizes = [8, 32], strides = [1, 1]} : vector<64x32xf32> to vector<8x32xf32>
    %cst_103 = arith.constant dense<0.000000e+00> : vector<8x32xf32>
    %351 = tpu.matmul %344, %251, %cst_103 {dimension_numbers = #tpu.dot_dimension_numbers<[1], [0], [0], [1], [0, 0, 1, 1], [], []>} : vector<8x32xf32>, vector<32x32xf32>, vector<8x32xf32> -> vector<8x32xf32>
    %cst_104 = arith.constant dense<0.000000e+00> : vector<8x32xf32>
    %352 = tpu.matmul %344, %253, %cst_104 {dimension_numbers = #tpu.dot_dimension_numbers<[1], [0], [0], [1], [0, 0, 1, 1], [], []>} : vector<8x32xf32>, vector<32x32xf32>, vector<8x32xf32> -> vector<8x32xf32>
    %cst_105 = arith.constant dense<0.000000e+00> : vector<8x32xf32>
    %353 = tpu.matmul %344, %255, %cst_105 {dimension_numbers = #tpu.dot_dimension_numbers<[1], [0], [0], [1], [0, 0, 1, 1], [], []>} : vector<8x32xf32>, vector<32x32xf32>, vector<8x32xf32> -> vector<8x32xf32>
    %354 = arith.addf %348, %351 : vector<8x32xf32>
    %355 = arith.negf %354 : vector<8x32xf32>
    %356 = math.exp %355 : vector<8x32xf32>
    %cst_106 = arith.constant 1.000000e+00 : f32
    %357 = vector.broadcast %cst_106 : f32 to vector<8x32xf32>
    %358 = arith.addf %357, %356 : vector<8x32xf32>
    %359 = arith.divf %357, %358 : vector<8x32xf32>
    %360 = arith.addf %349, %352 : vector<8x32xf32>
    %361 = arith.negf %360 : vector<8x32xf32>
    %362 = math.exp %361 : vector<8x32xf32>
    %cst_107 = arith.constant 1.000000e+00 : f32
    %363 = vector.broadcast %cst_107 : f32 to vector<8x32xf32>
    %364 = arith.addf %363, %362 : vector<8x32xf32>
    %365 = arith.divf %363, %364 : vector<8x32xf32>
    %366 = arith.addf %353, %246 : vector<8x32xf32>
    %367 = arith.mulf %359, %366 : vector<8x32xf32>
    %368 = arith.addf %350, %367 : vector<8x32xf32>
    %369 = math.tanh %368 : vector<8x32xf32>
    %cst_108 = arith.constant 1.000000e+00 : f32
    %370 = vector.broadcast %cst_108 : f32 to vector<8x32xf32>
    %371 = arith.subf %370, %365 : vector<8x32xf32>
    %372 = arith.mulf %371, %369 : vector<8x32xf32>
    %373 = arith.mulf %365, %344 : vector<8x32xf32>
    %374 = arith.addf %372, %373 : vector<8x32xf32>
    %c4_i32 = arith.constant 4 : i32
    %375 = vector.broadcast %c4_i32 : i32 to vector<8x32xi32>
    %376 = arith.cmpi eq, %249, %375 : vector<8x32xi32>
    %377 = arith.select %376, %374, %347 : vector<8x32xi1>, vector<8x32xf32>
    %378 = vector.extract_strided_slice %241 {offsets = [32, 0], sizes = [8, 32], strides = [1, 1]} : vector<64x32xf32> to vector<8x32xf32>
    %379 = vector.extract_strided_slice %242 {offsets = [32, 0], sizes = [8, 32], strides = [1, 1]} : vector<64x32xf32> to vector<8x32xf32>
    %380 = vector.extract_strided_slice %243 {offsets = [32, 0], sizes = [8, 32], strides = [1, 1]} : vector<64x32xf32> to vector<8x32xf32>
    %cst_109 = arith.constant dense<0.000000e+00> : vector<8x32xf32>
    %381 = tpu.matmul %374, %251, %cst_109 {dimension_numbers = #tpu.dot_dimension_numbers<[1], [0], [0], [1], [0, 0, 1, 1], [], []>} : vector<8x32xf32>, vector<32x32xf32>, vector<8x32xf32> -> vector<8x32xf32>
    %cst_110 = arith.constant dense<0.000000e+00> : vector<8x32xf32>
    %382 = tpu.matmul %374, %253, %cst_110 {dimension_numbers = #tpu.dot_dimension_numbers<[1], [0], [0], [1], [0, 0, 1, 1], [], []>} : vector<8x32xf32>, vector<32x32xf32>, vector<8x32xf32> -> vector<8x32xf32>
    %cst_111 = arith.constant dense<0.000000e+00> : vector<8x32xf32>
    %383 = tpu.matmul %374, %255, %cst_111 {dimension_numbers = #tpu.dot_dimension_numbers<[1], [0], [0], [1], [0, 0, 1, 1], [], []>} : vector<8x32xf32>, vector<32x32xf32>, vector<8x32xf32> -> vector<8x32xf32>
    %384 = arith.addf %378, %381 : vector<8x32xf32>
    %385 = arith.negf %384 : vector<8x32xf32>
    %386 = math.exp %385 : vector<8x32xf32>
    %cst_112 = arith.constant 1.000000e+00 : f32
    %387 = vector.broadcast %cst_112 : f32 to vector<8x32xf32>
    %388 = arith.addf %387, %386 : vector<8x32xf32>
    %389 = arith.divf %387, %388 : vector<8x32xf32>
    %390 = arith.addf %379, %382 : vector<8x32xf32>
    %391 = arith.negf %390 : vector<8x32xf32>
    %392 = math.exp %391 : vector<8x32xf32>
    %cst_113 = arith.constant 1.000000e+00 : f32
    %393 = vector.broadcast %cst_113 : f32 to vector<8x32xf32>
    %394 = arith.addf %393, %392 : vector<8x32xf32>
    %395 = arith.divf %393, %394 : vector<8x32xf32>
    %396 = arith.addf %383, %246 : vector<8x32xf32>
    %397 = arith.mulf %389, %396 : vector<8x32xf32>
    %398 = arith.addf %380, %397 : vector<8x32xf32>
    %399 = math.tanh %398 : vector<8x32xf32>
    %cst_114 = arith.constant 1.000000e+00 : f32
    %400 = vector.broadcast %cst_114 : f32 to vector<8x32xf32>
    %401 = arith.subf %400, %395 : vector<8x32xf32>
    %402 = arith.mulf %401, %399 : vector<8x32xf32>
    %403 = arith.mulf %395, %374 : vector<8x32xf32>
    %404 = arith.addf %402, %403 : vector<8x32xf32>
    %c5_i32 = arith.constant 5 : i32
    %405 = vector.broadcast %c5_i32 : i32 to vector<8x32xi32>
    %406 = arith.cmpi eq, %249, %405 : vector<8x32xi32>
    %407 = arith.select %406, %404, %377 : vector<8x32xi1>, vector<8x32xf32>
    %408 = vector.extract_strided_slice %241 {offsets = [40, 0], sizes = [8, 32], strides = [1, 1]} : vector<64x32xf32> to vector<8x32xf32>
    %409 = vector.extract_strided_slice %242 {offsets = [40, 0], sizes = [8, 32], strides = [1, 1]} : vector<64x32xf32> to vector<8x32xf32>
    %410 = vector.extract_strided_slice %243 {offsets = [40, 0], sizes = [8, 32], strides = [1, 1]} : vector<64x32xf32> to vector<8x32xf32>
    %cst_115 = arith.constant dense<0.000000e+00> : vector<8x32xf32>
    %411 = tpu.matmul %404, %251, %cst_115 {dimension_numbers = #tpu.dot_dimension_numbers<[1], [0], [0], [1], [0, 0, 1, 1], [], []>} : vector<8x32xf32>, vector<32x32xf32>, vector<8x32xf32> -> vector<8x32xf32>
    %cst_116 = arith.constant dense<0.000000e+00> : vector<8x32xf32>
    %412 = tpu.matmul %404, %253, %cst_116 {dimension_numbers = #tpu.dot_dimension_numbers<[1], [0], [0], [1], [0, 0, 1, 1], [], []>} : vector<8x32xf32>, vector<32x32xf32>, vector<8x32xf32> -> vector<8x32xf32>
    %cst_117 = arith.constant dense<0.000000e+00> : vector<8x32xf32>
    %413 = tpu.matmul %404, %255, %cst_117 {dimension_numbers = #tpu.dot_dimension_numbers<[1], [0], [0], [1], [0, 0, 1, 1], [], []>} : vector<8x32xf32>, vector<32x32xf32>, vector<8x32xf32> -> vector<8x32xf32>
    %414 = arith.addf %408, %411 : vector<8x32xf32>
    %415 = arith.negf %414 : vector<8x32xf32>
    %416 = math.exp %415 : vector<8x32xf32>
    %cst_118 = arith.constant 1.000000e+00 : f32
    %417 = vector.broadcast %cst_118 : f32 to vector<8x32xf32>
    %418 = arith.addf %417, %416 : vector<8x32xf32>
    %419 = arith.divf %417, %418 : vector<8x32xf32>
    %420 = arith.addf %409, %412 : vector<8x32xf32>
    %421 = arith.negf %420 : vector<8x32xf32>
    %422 = math.exp %421 : vector<8x32xf32>
    %cst_119 = arith.constant 1.000000e+00 : f32
    %423 = vector.broadcast %cst_119 : f32 to vector<8x32xf32>
    %424 = arith.addf %423, %422 : vector<8x32xf32>
    %425 = arith.divf %423, %424 : vector<8x32xf32>
    %426 = arith.addf %413, %246 : vector<8x32xf32>
    %427 = arith.mulf %419, %426 : vector<8x32xf32>
    %428 = arith.addf %410, %427 : vector<8x32xf32>
    %429 = math.tanh %428 : vector<8x32xf32>
    %cst_120 = arith.constant 1.000000e+00 : f32
    %430 = vector.broadcast %cst_120 : f32 to vector<8x32xf32>
    %431 = arith.subf %430, %425 : vector<8x32xf32>
    %432 = arith.mulf %431, %429 : vector<8x32xf32>
    %433 = arith.mulf %425, %404 : vector<8x32xf32>
    %434 = arith.addf %432, %433 : vector<8x32xf32>
    %c6_i32 = arith.constant 6 : i32
    %435 = vector.broadcast %c6_i32 : i32 to vector<8x32xi32>
    %436 = arith.cmpi eq, %249, %435 : vector<8x32xi32>
    %437 = arith.select %436, %434, %407 : vector<8x32xi1>, vector<8x32xf32>
    %438 = vector.extract_strided_slice %241 {offsets = [48, 0], sizes = [8, 32], strides = [1, 1]} : vector<64x32xf32> to vector<8x32xf32>
    %439 = vector.extract_strided_slice %242 {offsets = [48, 0], sizes = [8, 32], strides = [1, 1]} : vector<64x32xf32> to vector<8x32xf32>
    %440 = vector.extract_strided_slice %243 {offsets = [48, 0], sizes = [8, 32], strides = [1, 1]} : vector<64x32xf32> to vector<8x32xf32>
    %cst_121 = arith.constant dense<0.000000e+00> : vector<8x32xf32>
    %441 = tpu.matmul %434, %251, %cst_121 {dimension_numbers = #tpu.dot_dimension_numbers<[1], [0], [0], [1], [0, 0, 1, 1], [], []>} : vector<8x32xf32>, vector<32x32xf32>, vector<8x32xf32> -> vector<8x32xf32>
    %cst_122 = arith.constant dense<0.000000e+00> : vector<8x32xf32>
    %442 = tpu.matmul %434, %253, %cst_122 {dimension_numbers = #tpu.dot_dimension_numbers<[1], [0], [0], [1], [0, 0, 1, 1], [], []>} : vector<8x32xf32>, vector<32x32xf32>, vector<8x32xf32> -> vector<8x32xf32>
    %cst_123 = arith.constant dense<0.000000e+00> : vector<8x32xf32>
    %443 = tpu.matmul %434, %255, %cst_123 {dimension_numbers = #tpu.dot_dimension_numbers<[1], [0], [0], [1], [0, 0, 1, 1], [], []>} : vector<8x32xf32>, vector<32x32xf32>, vector<8x32xf32> -> vector<8x32xf32>
    %444 = arith.addf %438, %441 : vector<8x32xf32>
    %445 = arith.negf %444 : vector<8x32xf32>
    %446 = math.exp %445 : vector<8x32xf32>
    %cst_124 = arith.constant 1.000000e+00 : f32
    %447 = vector.broadcast %cst_124 : f32 to vector<8x32xf32>
    %448 = arith.addf %447, %446 : vector<8x32xf32>
    %449 = arith.divf %447, %448 : vector<8x32xf32>
    %450 = arith.addf %439, %442 : vector<8x32xf32>
    %451 = arith.negf %450 : vector<8x32xf32>
    %452 = math.exp %451 : vector<8x32xf32>
    %cst_125 = arith.constant 1.000000e+00 : f32
    %453 = vector.broadcast %cst_125 : f32 to vector<8x32xf32>
    %454 = arith.addf %453, %452 : vector<8x32xf32>
    %455 = arith.divf %453, %454 : vector<8x32xf32>
    %456 = arith.addf %443, %246 : vector<8x32xf32>
    %457 = arith.mulf %449, %456 : vector<8x32xf32>
    %458 = arith.addf %440, %457 : vector<8x32xf32>
    %459 = math.tanh %458 : vector<8x32xf32>
    %cst_126 = arith.constant 1.000000e+00 : f32
    %460 = vector.broadcast %cst_126 : f32 to vector<8x32xf32>
    %461 = arith.subf %460, %455 : vector<8x32xf32>
    %462 = arith.mulf %461, %459 : vector<8x32xf32>
    %463 = arith.mulf %455, %434 : vector<8x32xf32>
    %464 = arith.addf %462, %463 : vector<8x32xf32>
    %c7_i32 = arith.constant 7 : i32
    %465 = vector.broadcast %c7_i32 : i32 to vector<8x32xi32>
    %466 = arith.cmpi eq, %249, %465 : vector<8x32xi32>
    %467 = arith.select %466, %464, %437 : vector<8x32xi1>, vector<8x32xf32>
    %468 = vector.extract_strided_slice %241 {offsets = [56, 0], sizes = [8, 32], strides = [1, 1]} : vector<64x32xf32> to vector<8x32xf32>
    %469 = vector.extract_strided_slice %242 {offsets = [56, 0], sizes = [8, 32], strides = [1, 1]} : vector<64x32xf32> to vector<8x32xf32>
    %470 = vector.extract_strided_slice %243 {offsets = [56, 0], sizes = [8, 32], strides = [1, 1]} : vector<64x32xf32> to vector<8x32xf32>
    %cst_127 = arith.constant dense<0.000000e+00> : vector<8x32xf32>
    %471 = tpu.matmul %464, %251, %cst_127 {dimension_numbers = #tpu.dot_dimension_numbers<[1], [0], [0], [1], [0, 0, 1, 1], [], []>} : vector<8x32xf32>, vector<32x32xf32>, vector<8x32xf32> -> vector<8x32xf32>
    %cst_128 = arith.constant dense<0.000000e+00> : vector<8x32xf32>
    %472 = tpu.matmul %464, %253, %cst_128 {dimension_numbers = #tpu.dot_dimension_numbers<[1], [0], [0], [1], [0, 0, 1, 1], [], []>} : vector<8x32xf32>, vector<32x32xf32>, vector<8x32xf32> -> vector<8x32xf32>
    %cst_129 = arith.constant dense<0.000000e+00> : vector<8x32xf32>
    %473 = tpu.matmul %464, %255, %cst_129 {dimension_numbers = #tpu.dot_dimension_numbers<[1], [0], [0], [1], [0, 0, 1, 1], [], []>} : vector<8x32xf32>, vector<32x32xf32>, vector<8x32xf32> -> vector<8x32xf32>
    %474 = arith.addf %468, %471 : vector<8x32xf32>
    %475 = arith.negf %474 : vector<8x32xf32>
    %476 = math.exp %475 : vector<8x32xf32>
    %cst_130 = arith.constant 1.000000e+00 : f32
    %477 = vector.broadcast %cst_130 : f32 to vector<8x32xf32>
    %478 = arith.addf %477, %476 : vector<8x32xf32>
    %479 = arith.divf %477, %478 : vector<8x32xf32>
    %480 = arith.addf %469, %472 : vector<8x32xf32>
    %481 = arith.negf %480 : vector<8x32xf32>
    %482 = math.exp %481 : vector<8x32xf32>
    %cst_131 = arith.constant 1.000000e+00 : f32
    %483 = vector.broadcast %cst_131 : f32 to vector<8x32xf32>
    %484 = arith.addf %483, %482 : vector<8x32xf32>
    %485 = arith.divf %483, %484 : vector<8x32xf32>
    %486 = arith.addf %473, %246 : vector<8x32xf32>
    %487 = arith.mulf %479, %486 : vector<8x32xf32>
    %488 = arith.addf %470, %487 : vector<8x32xf32>
    %489 = math.tanh %488 : vector<8x32xf32>
    %cst_132 = arith.constant 1.000000e+00 : f32
    %490 = vector.broadcast %cst_132 : f32 to vector<8x32xf32>
    %491 = arith.subf %490, %485 : vector<8x32xf32>
    %492 = arith.mulf %491, %489 : vector<8x32xf32>
    %493 = arith.mulf %485, %464 : vector<8x32xf32>
    %494 = arith.addf %492, %493 : vector<8x32xf32>
    %c8_i32 = arith.constant 8 : i32
    %495 = vector.broadcast %c8_i32 : i32 to vector<8x32xi32>
    %496 = arith.cmpi eq, %249, %495 : vector<8x32xi32>
    %497 = arith.select %496, %494, %467 : vector<8x32xi1>, vector<8x32xf32>
    %c0_133 = arith.constant 0 : index
    %c0_134 = arith.constant 0 : index
    %498 = vector.load %arg12[%c0_133, %c0_134] : memref<32x30xf32, #tpu.memory_space<vmem>>, vector<32x30xf32>
    %cst_135 = arith.constant dense<0.000000e+00> : vector<8x30xf32>
    %499 = tpu.matmul %497, %498, %cst_135 {dimension_numbers = #tpu.dot_dimension_numbers<[1], [0], [0], [1], [0, 0, 1, 1], [], []>} : vector<8x32xf32>, vector<32x30xf32>, vector<8x30xf32> -> vector<8x30xf32>
    %c0_136 = arith.constant 0 : index
    %c0_137 = arith.constant 0 : index
    %500 = vector.load %arg13[%c0_136, %c0_137] : memref<1x30xf32, #tpu.memory_space<vmem>>, vector<1x30xf32>
    %501 = vector.broadcast %500 : vector<1x30xf32> to vector<8x30xf32>
    %502 = arith.addf %499, %501 : vector<8x30xf32>
    %503 = math.tanh %502 : vector<8x30xf32>
    %c0_138 = arith.constant 0 : index
    %c0_139 = arith.constant 0 : index
    %504 = vector.load %arg14[%c0_138, %c0_139] : memref<30x12xf32, #tpu.memory_space<vmem>>, vector<30x12xf32>
    %cst_140 = arith.constant dense<0.000000e+00> : vector<8x12xf32>
    %505 = tpu.matmul %503, %504, %cst_140 {dimension_numbers = #tpu.dot_dimension_numbers<[1], [0], [0], [1], [0, 0, 1, 1], [], []>} : vector<8x30xf32>, vector<30x12xf32>, vector<8x12xf32> -> vector<8x12xf32>
    %c0_141 = arith.constant 0 : index
    %c0_142 = arith.constant 0 : index
    %506 = vector.load %arg15[%c0_141, %c0_142] : memref<1x12xf32, #tpu.memory_space<vmem>>, vector<1x12xf32>
    %507 = vector.broadcast %506 : vector<1x12xf32> to vector<8x12xf32>
    %508 = arith.addf %505, %507 : vector<8x12xf32>
    %c0_143 = arith.constant 0 : index
    %c0_144 = arith.constant 0 : index
    %509 = vector.load %arg16[%c0_143, %c0_144] : memref<8x12xf32, #tpu.memory_space<vmem>>, vector<8x12xf32>
    tpu.vector_store %arg16[%c0_143, %c0_144], %508 {strides = array<i32>} : memref<8x12xf32, #tpu.memory_space<vmem>>, vector<8x12xf32>,
    return
  }
}

</mosaic_0001>

<bundles_post_ra>
// kernel: motion_discriminator_forward.1
= control target key start
LH: loop header
LB: loop body
LE: loop exit
PB: predicated region body
PF: predicated region fallthrough
CT: control target
= control target key end

     0   :  { %vm71_vm0 = vcmask 146432   ;;  %v6010_v2 = vmov 0.0|0.0   ;;  %vm6011_vm1 = vmmov 0   ;;  %v6012_v7 = vmov 0.0   ;;  %s6013_s26 = smov 64   ;;  %s6014_s27 = smov 32   ;;  %s6900_s2 = inlined_call_operand.vmem [shape: f32[18,96], index: 2, kind: input, shape index: {}]   ;;  %s6901_s4 = inlined_call_operand.vmem [shape: f32[3,32,32], index: 4, kind: input, shape index: {}]   ;;  %s6902_s1 = inlined_call_operand.vmem [shape: f32[64,18], index: 1, kind: input, shape index: {}]   ;;  %s6903_s6 = inlined_call_operand.vmem [shape: f32[8,32], index: 6, kind: input, shape index: {}]   ;;  %s6904_s3 = inlined_call_operand.vmem [shape: f32[1,96], index: 3, kind: input, shape index: {}]   ;;  %s6905_s5 = inlined_call_operand.vmem [shape: f32[1,32], index: 5, kind: input, shape index: {}]   ;;  %s6906_s7 = inlined_call_operand.vmem [shape: f32[32,96], index: 7, kind: input, shape index: {}]   ;;  %s6907_s9 = inlined_call_operand.vmem [shape: f32[3,32,32], index: 9, kind: input, shape index: {}]   ;;  %s6908_s11 = inlined_call_operand.vmem [shape: f32[8,32], index: 11, kind: input, shape index: {}]   ;;  %s6909_s8 = inlined_call_operand.vmem [shape: f32[1,96], index: 8, kind: input, shape index: {}]   ;;  %s6910_s10 = inlined_call_operand.vmem [shape: f32[1,32], index: 10, kind: input, shape index: {}]   ;;  %s6911_s0 = inlined_call_operand.vmem [shape: s32[8,1], index: 0, kind: input, shape index: {}]   ;;  %s6912_s12 = inlined_call_operand.vmem [shape: f32[32,30], index: 12, kind: input, shape index: {}]   ;;  %s6913_s14 = inlined_call_operand.vmem [shape: f32[30,12], index: 14, kind: input, shape index: {}]   ;;  %s6914_s13 = inlined_call_operand.vmem [shape: f32[1,30], index: 13, kind: input, shape index: {}]   ;;  %s6915_s15 = inlined_call_operand.vmem [shape: f32[1,12], index: 15, kind: input, shape index: {}]   ;;  %s6916_s16 = inlined_call_operand.vmem [shape: f32[8,12], index: 16, kind: output, shape index: {}]  }
   0x1   :  { %6918 = sst [smem:[#allocation2_spill]] %s6900_s2  ;;  %5530 = vmatprep.subr.bf16.mxu1 %v6010_v2  ;;  %v212_v3 = vld [vmem:[%s6901_s4] sm:$0xff]  ;;  %v213_v5 = vld [vmem:[%s6901_s4 + $0x8] sm:$0xff]  ;;  %4964 = vmatprep.mubr.msk.f32.mxu1 %vm6011_vm1, %v6012_v7  ;;  %vm96_vm2 = vcmask 1041408   ;;  %v214_v10 = vld [vmem:[%s6901_s4 + $0x10] sm:$0xff]  ;;  %vm227_vm3 = vcmask 261120  }
   0x2   :  { %s6919_s23 = sld [smem:[#allocation2_spill]]  ;;  %v53_v6 = vld [vmem:[%s6902_s1] sm:$0xff]  ;;  %v6121_v8 = vpack.c.bf16 %v213_v5, %v212_v3  ;;  %v215_v11 = vld [vmem:[%s6901_s4 + $0x18] sm:$0xff]  ;;  %v4559_v13 = vld [vmem:[%s6901_s4 + $0x48] sm:$0xff]  ;;  %vm4463_vm12 = vcmask 1045504   ;;  %vm6017_vm13 = vmmov 1  }
   0x3   :  { %4944 = vmatprep.mubr.msk.f32.mxu0 %vm71_vm0, %v53_v6  ;;  %v4558_v12 = vld [vmem:[%s6901_s4 + $0x40] sm:$0xff]  ;;  %v6140_v14 = vpack.c.bf16 %v215_v11, %v214_v10  ;;  %v54_v15 = vld [vmem:[%s6902_s1 + $0x8] sm:$0xff]  ;;  %v55_v17 = vld [vmem:[%s6902_s1 + $0x10] sm:$0xff]  ;;  %vm4459_vm15 = vcmask 244736  }
   0x4   :  { %5532 = vmatpush3.bf16.msra.mxu1 %v6121_v8  ;;  %v6147_v16 = vpack.c.bf16 %v4559_v13, %v4558_v12  ;;  %v4554_v18 = vld [vmem:[%s6901_s4 + $0x20] sm:$0xff]  ;;  %v4560_v19 = vld [vmem:[%s6901_s4 + $0x50] sm:$0xff]  ;;  %v4561_v20 = vld [vmem:[%s6901_s4 + $0x58] sm:$0xff] }
   0x5   :  { %5533 = vmatprep.subr.bf16.mxu1 %v6010_v2  ;;  %v4555_v21 = vld [vmem:[%s6901_s4 + $0x28] sm:$0xff]  ;;  %v6169_v22 = vld [vmem:[%s6903_s6] sm:$0xff]  ;;  %v56_v24 = vld [vmem:[%s6902_s1 + $0x18] sm:$0xff]  ;;  %v6180_v25 = vpack.c.bf16 %v4561_v20, %v4560_v19 }
   0x6   :  { %v6173_v23 = vpack.c.bf16 %v4555_v21, %v4554_v18  ;;  %v4556_v26 = vld [vmem:[%s6901_s4 + $0x30] sm:$0xff]  ;;  %v4557_v27 = vld [vmem:[%s6901_s4 + $0x38] sm:$0xff]  ;;  %v57_v28 = vld [vmem:[%s6902_s1 + $0x20] sm:$0xff] }
   0x7   :  { %v6199_v29 = vpack.c.bf16 %v4557_v27, %v4556_v26  ;;  %v58_v30 = vld [vmem:[%s6902_s1 + $0x28] sm:$0xff]  ;;  %v59_v31 = vld [vmem:[%s6902_s1 + $0x30] sm:$0xff]  ;;  %v60_v32 = vld [vmem:[%s6902_s1 + $0x38] sm:$0xff] }
   0x8   :  { %v61_v0 = vld [vmem:[%s6919_s23] sm:$0xff]  ;;  %v62_v1 = vld [vmem:[%s6919_s23 + $0x8] sm:$0xff]  ;;  %v63_v9 = vld [vmem:[%s6919_s23 + $0x10] sm:$0x3]  ;;  %5535 = vmatpush3.bf16.msra.mxu1 %v6140_v14  ;;  %s6015_s23 = smov 96  }
   0x9   :  { %v5526_v4 = vpack.c.bf16 %v62_v1, %v61_v0  ;;  %5536 = vmatprep.subr.bf16.mxu1 %v6010_v2  ;;  %v4543_v33 = vld [vmem:[%s6904_s3] ss:$0 sm:$0xff]  ;;  %vm5837_vm14 = vmpackc.low %vm4463_vm12, %vm6017_vm13 }
   0xa   :  { %v6257_v60 = vld [vmem:[%s6905_s5] ss:$0 sm:$0xff] }
   0xb   :  { %5527 = vmatprep.subr.bf16.mxu0 %v5526_v4  ;;  %4965 = vmatmul.mubr.msk.f32.vlgmr.msra.gmra.mrb[0].mxu1 %vm227_vm3, %v6169_v22 }
   0xc   :  { %5529 = vmatpush3.bf16.msra.mxu0 %v5526_v4  ;;  %4975 = vmatprep.mubr.msk.f32.mxu1 %vm6011_vm1, %v6012_v7 }
   0xd   :  { %4942 = vmatprep.subr.msk.mxu0 %vm96_vm2, %v63_v9  ;;  %5538 = vmatpush3.bf16.msra.mxu1 %v6173_v23 }
   0xe   :  { %5539 = vmatprep.subr.bf16.mxu1 %v6010_v2 }
  0x10   :  { %4943 = vmatpush3.msk.msra.mxu0 %vm96_vm2, %v63_v9 }
  0x11   :  { %4945 = vmatmul.mubr.msk.f32.vlgmr.msra.gmra.mrb[0].mxu0 %vm71_vm0, %v54_v15  ;;  %5542 = vmatprep.subr.bf16.mxu0 %v6010_v2 }
  0x12   :  { %5544 = vmatpush3.bf16.msra.mxu0 %v6147_v16  ;;  %4947 = vmatprep.mubr.msk.f32.mxu0 %vm71_vm0, %v55_v17 }
  0x13   :  { %5545 = vmatprep.subr.bf16.mxu0 %v6010_v2  ;;  %5541 = vmatpush3.bf16.msra.mxu1 %v6199_v29 }
  0x14   :  { %5548 = vmatprep.subr.bf16.mxu1 %v6010_v2 }
  0x15   :  { %4948 = vmatmul.mubr.msk.f32.gmra.mrb[2].mxu0 %vm71_vm0, %v56_v24 }
  0x16   :  { %4950 = vmatprep.mubr.msk.f32.mxu0 %vm71_vm0, %v57_v28  ;;  %5547 = vmatpush3.bf16.msra.mxu0 %v6180_v25 }
  0x17   :  { %5554 = vmatprep.subr.bf16.mxu0 %v6010_v2  ;;  %4976 = vmatmul.mubr.msk.f32.vlgmr.msra.gmra.mrb[2].mxu1 %vm227_vm3, %v6169_v22 }
  0x18   :  { %5550 = vmatpush3.bf16.msra.mxu1 %v6121_v8  ;;  %4997 = vmatprep.mubr.msk.f32.mxu1 %vm6011_vm1, %v6012_v7 }
  0x19   :  { %4951 = vmatmul.mubr.msk.f32.gmra.mrb[4].mxu0 %vm71_vm0, %v58_v30  ;;  %5551 = vmatprep.subr.bf16.mxu1 %v6010_v2 }
  0x1a   :  { %4953 = vmatprep.mubr.msk.f32.mxu0 %vm71_vm0, %v59_v31 }
  0x1c   :  { %5553 = vmatpush3.bf16.msra.mxu1 %v6140_v14 }
  0x1d   :  { %4954 = vmatmul.mubr.msk.f32.gmra.mrb[6].mxu0 %vm71_vm0, %v60_v32  ;;  %5560 = vmatprep.subr.bf16.mxu1 %v6010_v2  ;;  %vm4537_vm0 = vcmask 97280  }
  0x1e   :  { %4986 = vmatprep.mubr.msk.f32.mxu0 %vm6011_vm1, %v6012_v7 }
  0x21   :  { %4987 = vmatmul.mubr.msk.f32.vlgmr.msra.gmra.mrb[8].mxu0 %vm227_vm3, %v6169_v22 }
  0x22   :  { %5556 = vmatpush3.bf16.msra.mxu0 %v6173_v23  ;;  %5008 = vmatprep.mubr.msk.f32.mxu0 %vm6011_vm1, %v6012_v7 }
  0x23   :  { %5557 = vmatprep.subr.bf16.mxu0 %v6010_v2 }
  0x26   :  { %5559 = vmatpush3.bf16.msra.mxu0 %v6199_v29 }
  0x27   :  { %5566 = vmatprep.subr.bf16.mxu0 %v6010_v2 }
  0xde   :  { %v297_v38 = vpop.f32.mrb[0].mxu1 }
  0xdf   :  { %v4966_v39 = vpop.f32.mrb[1].mxu1 }
  0xe4   :  { %v4946_v34 = vpop.f32.mrb[0].mxu0 }
  0xe5   :  { %v6240_v35 = vadd.f32 %v4946_v34, %v4543_v33  ;;  %v166_v36 = vpop.f32.mrb[1].mxu0 }
  0xe6   :  { %v167_v37 = vadd.f32 %v4543_v33, %v166_v36 }
  0xe8   :  { %v371_v40 = vadd.f32 %v297_v38, %v167_v37  ;;  %v4949_v41 = vpop.f32.mrb[2].mxu0 }
  0xe9   :  { %v6242_v42 = vadd.f32 %v4949_v41, %v4543_v33  ;;  %v176_v43 = vpop.f32.mrb[3].mxu0 }
  0xea   :  { %v4564_v44 = vmul.f32 -1.442695, %v371_v40  ;;  %v6244_v45 = vadd.f32 %v4543_v33, %v176_v43  ;;  %v367_v50 = vpop.f32.mrb[2].mxu1 }
  0xeb   :  { %v4977_v52 = vpop.f32.mrb[3].mxu1 }
  0xec   :  { %5848 = vpow2.f32 %v4564_v44  ;;  %v4952_v46 = vpop.f32.mrb[4].mxu0 }
  0xed   :  { %v6246_v47 = vadd.f32 %v4952_v46, %v4543_v33  ;;  %v186_v48 = vpop.f32.mrb[5].mxu0 }
  0xee   :  { %v6248_v49 = vadd.f32 %v4543_v33, %v186_v48 }
  0xf0   :  { %v4955_v51 = vpop.f32.mrb[6].mxu0 }
  0xf1   :  { %v6250_v53 = vadd.f32 %v4955_v51, %v4543_v33  ;;  %v196_v54 = vpop.f32.mrb[7].mxu0 }
  0xf2   :  { %v6252_v55 = vadd.f32 %v4543_v33, %v196_v54 }
  0xf4   :  { %v455_v56 = vpop.f32.mrb[8].mxu0 }
  0xf5   :  { %v4988_v57 = vpop.f32.mrb[9].mxu0  ;;  %v456_v61 = vadd.f32 %v6257_v60, %v455_v56 }
  0xf6   :  { %v5849_v58 = vpop.eup %5848 }
  0xf7   :  { %v375_v59 = vadd.f32 1.0, %v5849_v58 }
  0xf9   :  { %5850 = vrcp.f32 %v375_v59 }
 0x103   :  { %v5851_v62 = vpop.eup %5850 }
 0x104   :  { %v459_v63 = vmul.f32 %v5851_v62, %v456_v61 }
 0x106   :  { %461 = vrot.lane.b32.xlu0 %v459_v63, %s6013_s26 }
 0x10a   :  { %379 = vrot.lane.b32.xlu0 %v367_v50, %s6014_s27 }
 0x178   :  { %v462_v0 = vpop.permute.xlu0 %461 }
 0x179   :  { %v464_v1 = vadd.f32 %v462_v0, %v167_v37 }
 0x17b   :  { %5852 = vtanh.f32 %v464_v1 }
 0x17c   :  { %v380_v4 = vpop.permute.xlu0 %379 }
 0x17d   :  { %v382_v5 = vadd.f32 %v380_v4, %v167_v37 }
 0x17f   :  { %v4565_v6 = vmul.f32 -1.442695, %v382_v5 }
 0x181   :  { %5854 = vpow2.f32 %v4565_v6 }
 0x185   :  { %v5853_v3 = vpop.eup %5852 }
 0x186   :  { %468 = vrot.lane.b32.xlu1 %v5853_v3, %s6015_s23 }
 0x18a   :  { %472 = vrot.lane.b32.xlu1 %v6169_v22, %s6014_s27 }
 0x18b   :  { %v5855_v9 = vpop.eup %5854 }
 0x18c   :  { %v386_v10 = vadd.f32 1.0, %v5855_v9 }
 0x18e   :  { %5856 = vrcp.f32 %v386_v10 }
 0x198   :  { %v5857_v11 = vpop.eup %5856 }
 0x199   :  { %v466_v13 = vsub.f32 1.0, %v5857_v11 }
 0x1f8   :  { %v469_v12 = vpop.permute.xlu1 %468 }
 0x1f9   :  { %v471_v17 = vmul.f32 %v469_v12, %v466_v13 }
 0x1fc   :  { %v473_v15 = vpop.permute.xlu1 %472 }
 0x1fd   :  { %v475_v18 = vmul.f32 %v5857_v11, %v473_v15 }
 0x1ff   :  { %v476_v19 = vadd.f32 %v475_v18, %v471_v17 }
 0x201   :  { %478 = vrot.lane.b32.xlu0 %v476_v19, %s6015_s23 }
 0x273   :  { %v6266_v20 = vpop.permute.xlu0 %478 }
 0x274   :  { %4998 = vmatmul.mubr.msk.f32.vlgmr.msra.gmra.mrb[4].mxu1 %vm227_vm3, %v6266_v20  ;;  %5009 = vmatmul.mubr.msk.f32.vlgmr.msra.gmra.mrb[10].mxu0 %vm227_vm3, %v6266_v20 }
 0x275   :  { %5562 = vmatpush3.bf16.msra.mxu1 %v6147_v16  ;;  %5019 = vmatprep.mubr.msk.f32.mxu1 %vm6011_vm1, %v6012_v7 }
 0x276   :  { %5563 = vmatprep.subr.bf16.mxu1 %v6010_v2  ;;  %5568 = vmatpush3.bf16.msra.mxu0 %v6121_v8 }
 0x277   :  { %5569 = vmatprep.subr.bf16.mxu0 %v6010_v2  ;;  %5030 = vmatprep.mubr.msk.f32.mxu0 %vm6011_vm1, %v6012_v7 }
 0x279   :  { %5565 = vmatpush3.bf16.msra.mxu1 %v6180_v25 }
 0x27a   :  { %5572 = vmatprep.subr.bf16.mxu1 %v6010_v2  ;;  %5571 = vmatpush3.bf16.msra.mxu0 %v6140_v14 }
 0x27b   :  { %5578 = vmatprep.subr.bf16.mxu0 %v6010_v2 }
 0x27c   :  { %5020 = vmatmul.mubr.msk.f32.vlgmr.msra.gmra.mrb[6].mxu1 %vm227_vm3, %v6266_v20 }
 0x27d   :  { %5574 = vmatpush3.bf16.msra.mxu1 %v6173_v23  ;;  %5041 = vmatprep.mubr.msk.f32.mxu1 %vm6011_vm1, %v6012_v7 }
 0x27e   :  { %5575 = vmatprep.subr.bf16.mxu1 %v6010_v2 }
 0x281   :  { %5577 = vmatpush3.bf16.msra.mxu1 %v6199_v29 }
 0x282   :  { %5584 = vmatprep.subr.bf16.mxu1 %v6010_v2 }
 0x347   :  { %v548_v21 = vpop.f32.mrb[4].mxu1  ;;  %v618_v22 = vpop.f32.mrb[10].mxu0 }
 0x348   :  { %v622_v24 = vadd.f32 %v548_v21, %v6240_v35  ;;  %630 = vrot.lane.b32.xlu0 %v618_v22, %s6014_s27  ;;  %v4999_v26 = vpop.f32.mrb[5].mxu1  ;;  %v5010_v27 = vpop.f32.mrb[11].mxu0 }
 0x34a   :  { %v4569_v28 = vmul.f32 -1.442695, %v622_v24 }
 0x34c   :  { %5858 = vpow2.f32 %v4569_v28 }
 0x34f   :  { %v706_v30 = vpop.f32.mrb[6].mxu1 }
 0x350   :  { %v5021_v31 = vpop.f32.mrb[7].mxu1  ;;  %v707_v34 = vadd.f32 %v6257_v60, %v706_v30 }
 0x356   :  { %v5859_v32 = vpop.eup %5858 }
 0x357   :  { %v626_v33 = vadd.f32 1.0, %v5859_v32 }
 0x359   :  { %5860 = vrcp.f32 %v626_v33 }
 0x363   :  { %v5861_v36 = vpop.eup %5860 }
 0x364   :  { %v710_v37 = vmul.f32 %v5861_v36, %v707_v34 }
 0x366   :  { %712 = vrot.lane.b32.xlu1 %v710_v37, %s6013_s26 }
 0x3ba   :  { %v631_v41 = vpop.permute.xlu0 %630 }
 0x3bb   :  { %v633_v43 = vadd.f32 %v631_v41, %v6240_v35 }
 0x3bd   :  { %v4570_v44 = vmul.f32 -1.442695, %v633_v43 }
 0x3d8   :  { %v713_v38 = vpop.permute.xlu1 %712 }
 0x3d9   :  { %v715_v39 = vadd.f32 %v713_v38, %v6240_v35 }
 0x3db   :  { %5862 = vtanh.f32 %v715_v39 }
 0x3dc   :  { %5864 = vpow2.f32 %v4570_v44 }
 0x3e5   :  { %v5863_v40 = vpop.eup %5862 }
 0x3e6   :  { %719 = vrot.lane.b32.xlu1 %v5863_v40, %s6015_s23  ;;  %v5865_v46 = vpop.eup %5864 }
 0x3e7   :  { %v637_v48 = vadd.f32 1.0, %v5865_v46 }
 0x3e9   :  { %5866 = vrcp.f32 %v637_v48 }
 0x3f3   :  { %v5867_v50 = vpop.eup %5866 }
 0x3f4   :  { %v717_v51 = vsub.f32 1.0, %v5867_v50  ;;  %v723_v54 = vmul.f32 %v5867_v50, %v476_v19 }
 0x458   :  { %v720_v52 = vpop.permute.xlu1 %719 }
 0x459   :  { %v722_v56 = vmul.f32 %v720_v52, %v717_v51 }
 0x45b   :  { %v724_v57 = vadd.f32 %v723_v54, %v722_v56 }
 0x45d   :  { %726 = vrot.lane.b32.xlu0 %v724_v57, %s6015_s23 }
 0x4cf   :  { %v6300_v58 = vpop.permute.xlu0 %726 }
 0x4d0   :  { %5031 = vmatmul.mubr.msk.f32.vlgmr.msra.gmra.mrb[12].mxu0 %vm227_vm3, %v6300_v58  ;;  %5042 = vmatmul.mubr.msk.f32.vlgmr.msra.gmra.mrb[8].mxu1 %vm227_vm3, %v6300_v58 }
 0x4d1   :  { %5580 = vmatpush3.bf16.msra.mxu0 %v6147_v16  ;;  %5052 = vmatprep.mubr.msk.f32.mxu0 %vm6011_vm1, %v6012_v7 }
 0x4d2   :  { %5581 = vmatprep.subr.bf16.mxu0 %v6010_v2  ;;  %5586 = vmatpush3.bf16.msra.mxu1 %v6121_v8 }
 0x4d3   :  { %5587 = vmatprep.subr.bf16.mxu1 %v6010_v2  ;;  %5063 = vmatprep.mubr.msk.f32.mxu1 %vm6011_vm1, %v6012_v7 }
 0x4d5   :  { %5583 = vmatpush3.bf16.msra.mxu0 %v6180_v25 }
 0x4d6   :  { %5590 = vmatprep.subr.bf16.mxu0 %v6010_v2  ;;  %5589 = vmatpush3.bf16.msra.mxu1 %v6140_v14 }
 0x4d7   :  { %5596 = vmatprep.subr.bf16.mxu1 %v6010_v2 }
 0x4d8   :  { %5053 = vmatmul.mubr.msk.f32.vlgmr.msra.gmra.mrb[14].mxu0 %vm227_vm3, %v6300_v58 }
 0x4d9   :  { %5592 = vmatpush3.bf16.msra.mxu0 %v6173_v23  ;;  %5074 = vmatprep.mubr.msk.f32.mxu0 %vm6011_vm1, %v6012_v7 }
 0x4da   :  { %5593 = vmatprep.subr.bf16.mxu0 %v6010_v2 }
 0x4dd   :  { %5595 = vmatpush3.bf16.msra.mxu0 %v6199_v29 }
 0x4de   :  { %5602 = vmatprep.subr.bf16.mxu0 %v6010_v2 }
 0x5a3   :  { %v796_v35 = vpop.f32.mrb[12].mxu0  ;;  %v866_v59 = vpop.f32.mrb[8].mxu1 }
 0x5a4   :  { %v870_v61 = vadd.f32 %v796_v35, %v6244_v45  ;;  %v5032_v62 = vpop.f32.mrb[13].mxu0  ;;  %878 = vrot.lane.b32.xlu0 %v866_v59, %s6014_s27  ;;  %v5043_v63 = vpop.f32.mrb[9].mxu1 }
 0x5a6   :  { %v4574_v0 = vmul.f32 -1.442695, %v870_v61 }
 0x5a8   :  { %5868 = vpow2.f32 %v4574_v0 }
 0x5ab   :  { %v954_v1 = vpop.f32.mrb[14].mxu0 }
 0x5ac   :  { %v5054_v3 = vpop.f32.mrb[15].mxu0  ;;  %v955_v6 = vadd.f32 %v6257_v60, %v954_v1 }
 0x5b2   :  { %v5869_v4 = vpop.eup %5868 }
 0x5b3   :  { %v874_v5 = vadd.f32 1.0, %v5869_v4 }
 0x5b5   :  { %5870 = vrcp.f32 %v874_v5 }
 0x5bf   :  { %v5871_v9 = vpop.eup %5870 }
 0x5c0   :  { %v958_v10 = vmul.f32 %v5871_v9, %v955_v6 }
 0x5c2   :  { %960 = vrot.lane.b32.xlu1 %v958_v10, %s6013_s26 }
 0x616   :  { %v879_v15 = vpop.permute.xlu0 %878 }
 0x617   :  { %v881_v17 = vadd.f32 %v879_v15, %v6244_v45 }
 0x619   :  { %v4575_v18 = vmul.f32 -1.442695, %v881_v17 }
 0x634   :  { %v961_v11 = vpop.permute.xlu1 %960 }
 0x635   :  { %v963_v12 = vadd.f32 %v961_v11, %v6244_v45 }
 0x637   :  { %5872 = vtanh.f32 %v963_v12 }
 0x638   :  { %5874 = vpow2.f32 %v4575_v18 }
 0x641   :  { %v5873_v13 = vpop.eup %5872 }
 0x642   :  { %967 = vrot.lane.b32.xlu1 %v5873_v13, %s6015_s23  ;;  %v5875_v19 = vpop.eup %5874 }
 0x643   :  { %v885_v21 = vadd.f32 1.0, %v5875_v19 }
 0x645   :  { %5876 = vrcp.f32 %v885_v21 }
 0x64f   :  { %v5877_v22 = vpop.eup %5876 }
 0x650   :  { %v965_v24 = vsub.f32 1.0, %v5877_v22  ;;  %v971_v28 = vmul.f32 %v5877_v22, %v724_v57 }
 0x6b4   :  { %v968_v26 = vpop.permute.xlu1 %967 }
 0x6b5   :  { %v970_v27 = vmul.f32 %v968_v26, %v965_v24 }
 0x6b7   :  { %v972_v30 = vadd.f32 %v971_v28, %v970_v27 }
 0x6b9   :  { %974 = vrot.lane.b32.xlu0 %v972_v30, %s6015_s23 }
 0x72b   :  { %v6334_v31 = vpop.permute.xlu0 %974 }
 0x72c   :  { %5064 = vmatmul.mubr.msk.f32.vlgmr.msra.gmra.mrb[10].mxu1 %vm227_vm3, %v6334_v31  ;;  %5075 = vmatmul.mubr.msk.f32.vlgmr.msra.gmra.mrb[16].mxu0 %vm227_vm3, %v6334_v31 }
 0x72d   :  { %5598 = vmatpush3.bf16.msra.mxu1 %v6147_v16  ;;  %5085 = vmatprep.mubr.msk.f32.mxu1 %vm6011_vm1, %v6012_v7 }
 0x72e   :  { %5599 = vmatprep.subr.bf16.mxu1 %v6010_v2  ;;  %5604 = vmatpush3.bf16.msra.mxu0 %v6121_v8 }
 0x72f   :  { %5605 = vmatprep.subr.bf16.mxu0 %v6010_v2  ;;  %5096 = vmatprep.mubr.msk.f32.mxu0 %vm6011_vm1, %v6012_v7 }
 0x731   :  { %5601 = vmatpush3.bf16.msra.mxu1 %v6180_v25 }
 0x732   :  { %5608 = vmatprep.subr.bf16.mxu1 %v6010_v2  ;;  %5607 = vmatpush3.bf16.msra.mxu0 %v6140_v14 }
 0x733   :  { %5614 = vmatprep.subr.bf16.mxu0 %v6010_v2 }
 0x734   :  { %5086 = vmatmul.mubr.msk.f32.vlgmr.msra.gmra.mrb[12].mxu1 %vm227_vm3, %v6334_v31 }
 0x735   :  { %5610 = vmatpush3.bf16.msra.mxu1 %v6173_v23  ;;  %5107 = vmatprep.mubr.msk.f32.mxu1 %vm6011_vm1, %v6012_v7 }
 0x736   :  { %5611 = vmatprep.subr.bf16.mxu1 %v6010_v2 }
 0x739   :  { %5613 = vmatpush3.bf16.msra.mxu1 %v6199_v29 }
 0x73a   :  { %5620 = vmatprep.subr.bf16.mxu1 %v6010_v2 }
 0x7ff   :  { %v1044_v45 = vpop.f32.mrb[10].mxu1  ;;  %v1114_v32 = vpop.f32.mrb[16].mxu0 }
 0x800   :  { %v1118_v33 = vadd.f32 %v1044_v45, %v6242_v42  ;;  %1126 = vrot.lane.b32.xlu0 %v1114_v32, %s6014_s27  ;;  %v5065_v34 = vpop.f32.mrb[11].mxu1  ;;  %v5076_v36 = vpop.f32.mrb[17].mxu0 }
 0x802   :  { %v4579_v37 = vmul.f32 -1.442695, %v1118_v33 }
 0x804   :  { %5878 = vpow2.f32 %v4579_v37 }
 0x807   :  { %v1202_v38 = vpop.f32.mrb[12].mxu1 }
 0x808   :  { %v5087_v39 = vpop.f32.mrb[13].mxu1  ;;  %v1203_v43 = vadd.f32 %v6257_v60, %v1202_v38 }
 0x80e   :  { %v5879_v40 = vpop.eup %5878 }
 0x80f   :  { %v1122_v41 = vadd.f32 1.0, %v5879_v40 }
 0x811   :  { %5880 = vrcp.f32 %v1122_v41 }
 0x81b   :  { %v5881_v44 = vpop.eup %5880 }
 0x81c   :  { %v1206_v46 = vmul.f32 %v5881_v44, %v1203_v43 }
 0x81e   :  { %1208 = vrot.lane.b32.xlu1 %v1206_v46, %s6013_s26 }
 0x872   :  { %v1127_v52 = vpop.permute.xlu0 %1126 }
 0x873   :  { %v1129_v54 = vadd.f32 %v1127_v52, %v6242_v42 }
 0x875   :  { %v4580_v56 = vmul.f32 -1.442695, %v1129_v54 }
 0x890   :  { %v1209_v48 = vpop.permute.xlu1 %1208 }
 0x891   :  { %v1211_v50 = vadd.f32 %v1209_v48, %v6242_v42 }
 0x893   :  { %5882 = vtanh.f32 %v1211_v50 }
 0x894   :  { %5884 = vpow2.f32 %v4580_v56 }
 0x89d   :  { %v5883_v51 = vpop.eup %5882 }
 0x89e   :  { %1215 = vrot.lane.b32.xlu1 %v5883_v51, %s6015_s23  ;;  %v5885_v57 = vpop.eup %5884 }
 0x89f   :  { %v1133_v35 = vadd.f32 1.0, %v5885_v57 }
 0x8a1   :  { %5886 = vrcp.f32 %v1133_v35 }
 0x8ab   :  { %v5887_v59 = vpop.eup %5886 }
 0x8ac   :  { %v1213_v61 = vsub.f32 1.0, %v5887_v59  ;;  %v1219_v63 = vmul.f32 %v5887_v59, %v972_v30 }
 0x910   :  { %v1216_v62 = vpop.permute.xlu1 %1215 }
 0x911   :  { %v1218_v0 = vmul.f32 %v1216_v62, %v1213_v61 }
 0x913   :  { %v1220_v1 = vadd.f32 %v1219_v63, %v1218_v0 }
 0x915   :  { %1222 = vrot.lane.b32.xlu0 %v1220_v1, %s6015_s23 }
 0x987   :  { %v6368_v3 = vpop.permute.xlu0 %1222 }
 0x988   :  { %5097 = vmatmul.mubr.msk.f32.vlgmr.msra.gmra.mrb[18].mxu0 %vm227_vm3, %v6368_v3  ;;  %5108 = vmatmul.mubr.msk.f32.vlgmr.msra.gmra.mrb[14].mxu1 %vm227_vm3, %v6368_v3 }
 0x989   :  { %5616 = vmatpush3.bf16.msra.mxu0 %v6147_v16  ;;  %5118 = vmatprep.mubr.msk.f32.mxu0 %vm6011_vm1, %v6012_v7 }
 0x98a   :  { %5617 = vmatprep.subr.bf16.mxu0 %v6010_v2  ;;  %5622 = vmatpush3.bf16.msra.mxu1 %v6121_v8 }
 0x98b   :  { %5623 = vmatprep.subr.bf16.mxu1 %v6010_v2  ;;  %5129 = vmatprep.mubr.msk.f32.mxu1 %vm6011_vm1, %v6012_v7 }
 0x98d   :  { %5619 = vmatpush3.bf16.msra.mxu0 %v6180_v25 }
 0x98e   :  { %5626 = vmatprep.subr.bf16.mxu0 %v6010_v2  ;;  %5625 = vmatpush3.bf16.msra.mxu1 %v6140_v14 }
 0x98f   :  { %5632 = vmatprep.subr.bf16.mxu1 %v6010_v2 }
 0x990   :  { %5119 = vmatmul.mubr.msk.f32.vlgmr.msra.gmra.mrb[20].mxu0 %vm227_vm3, %v6368_v3 }
 0x991   :  { %5628 = vmatpush3.bf16.msra.mxu0 %v6173_v23  ;;  %5140 = vmatprep.mubr.msk.f32.mxu0 %vm6011_vm1, %v6012_v7 }
 0x992   :  { %5629 = vmatprep.subr.bf16.mxu0 %v6010_v2 }
 0x995   :  { %5631 = vmatpush3.bf16.msra.mxu0 %v6199_v29 }
 0x996   :  { %5638 = vmatprep.subr.bf16.mxu0 %v6010_v2 }
 0xa5b   :  { %v1292_v42 = vpop.f32.mrb[18].mxu0  ;;  %v1362_v4 = vpop.f32.mrb[14].mxu1 }
 0xa5c   :  { %v1366_v5 = vadd.f32 %v1292_v42, %v6248_v49  ;;  %v5098_v6 = vpop.f32.mrb[19].mxu0  ;;  %1374 = vrot.lane.b32.xlu0 %v1362_v4, %s6014_s27  ;;  %v5109_v9 = vpop.f32.mrb[15].mxu1 }
 0xa5e   :  { %v4584_v10 = vmul.f32 -1.442695, %v1366_v5 }
 0xa60   :  { %5888 = vpow2.f32 %v4584_v10 }
 0xa63   :  { %v1450_v11 = vpop.f32.mrb[20].mxu0 }
 0xa64   :  { %v5120_v12 = vpop.f32.mrb[21].mxu0  ;;  %v1451_v17 = vadd.f32 %v6257_v60, %v1450_v11 }
 0xa6a   :  { %v5889_v13 = vpop.eup %5888 }
 0xa6b   :  { %v1370_v15 = vadd.f32 1.0, %v5889_v13 }
 0xa6d   :  { %5890 = vrcp.f32 %v1370_v15 }
 0xa77   :  { %v5891_v18 = vpop.eup %5890 }
 0xa78   :  { %v1454_v19 = vmul.f32 %v5891_v18, %v1451_v17 }
 0xa7a   :  { %1456 = vrot.lane.b32.xlu1 %v1454_v19, %s6013_s26 }
 0xace   :  { %v1375_v26 = vpop.permute.xlu0 %1374 }
 0xacf   :  { %v1377_v27 = vadd.f32 %v1375_v26, %v6248_v49 }
 0xad1   :  { %v4585_v28 = vmul.f32 -1.442695, %v1377_v27 }
 0xaec   :  { %v1457_v21 = vpop.permute.xlu1 %1456 }
 0xaed   :  { %v1459_v22 = vadd.f32 %v1457_v21, %v6248_v49 }
 0xaef   :  { %5892 = vtanh.f32 %v1459_v22 }
 0xaf0   :  { %5894 = vpow2.f32 %v4585_v28  ;;  %v2213_v28 = vld [vmem:[%s6906_s7] sm:$0xff] }
 0xaf9   :  { %v5893_v24 = vpop.eup %5892 }
 0xafa   :  { %1463 = vrot.lane.b32.xlu1 %v5893_v24, %s6015_s23  ;;  %v5895_v30 = vpop.eup %5894 }
 0xafb   :  { %v1381_v45 = vadd.f32 1.0, %v5895_v30  ;;  %v2214_v30 = vld [vmem:[%s6906_s7 + $0x8] sm:$0xff] }
 0xafd   :  { %5896 = vrcp.f32 %v1381_v45  ;;  %v5674_v45 = vpack.c.bf16 %v2214_v30, %v2213_v28  ;;  %v4619_v30 = vld [vmem:[%s6907_s9 + $0x58] sm:$0xff] }
 0xb07   :  { %v5897_v32 = vpop.eup %5896 }
 0xb08   :  { %v1461_v33 = vsub.f32 1.0, %v5897_v32  ;;  %v1467_v37 = vmul.f32 %v5897_v32, %v1220_v1 }
 0xb6c   :  { %v1464_v34 = vpop.permute.xlu1 %1463 }
 0xb6d   :  { %v1466_v36 = vmul.f32 %v1464_v34, %v1461_v33 }
 0xb6f   :  { %v1468_v38 = vadd.f32 %v1467_v37, %v1466_v36 }
 0xb71   :  { %1470 = vrot.lane.b32.xlu0 %v1468_v38, %s6015_s23 }
 0xbe3   :  { %v6402_v39 = vpop.permute.xlu0 %1470 }
 0xbe4   :  { %5130 = vmatmul.mubr.msk.f32.vlgmr.msra.gmra.mrb[16].mxu1 %vm227_vm3, %v6402_v39  ;;  %5141 = vmatmul.mubr.msk.f32.vlgmr.msra.gmra.mrb[22].mxu0 %vm227_vm3, %v6402_v39 }
 0xbe5   :  { %5634 = vmatpush3.bf16.msra.mxu1 %v6147_v16  ;;  %5151 = vmatprep.mubr.msk.f32.mxu1 %vm6011_vm1, %v6012_v7 }
 0xbe6   :  { %5635 = vmatprep.subr.bf16.mxu1 %v6010_v2  ;;  %5640 = vmatpush3.bf16.msra.mxu0 %v6121_v8 }
 0xbe7   :  { %5641 = vmatprep.subr.bf16.mxu0 %v6010_v2  ;;  %5162 = vmatprep.mubr.msk.f32.mxu0 %vm6011_vm1, %v6012_v7 }
 0xbe9   :  { %5637 = vmatpush3.bf16.msra.mxu1 %v6180_v25 }
 0xbea   :  { %5644 = vmatprep.subr.bf16.mxu1 %v6010_v2  ;;  %5643 = vmatpush3.bf16.msra.mxu0 %v6140_v14 }
 0xbeb   :  { %5650 = vmatprep.subr.bf16.mxu0 %v6010_v2 }
 0xbec   :  { %5152 = vmatmul.mubr.msk.f32.vlgmr.msra.gmra.mrb[18].mxu1 %vm227_vm3, %v6402_v39 }
 0xbed   :  { %5646 = vmatpush3.bf16.msra.mxu1 %v6173_v23  ;;  %5173 = vmatprep.mubr.msk.f32.mxu1 %vm6011_vm1, %v6012_v7 }
 0xbee   :  { %5647 = vmatprep.subr.bf16.mxu1 %v6010_v2 }
 0xbf1   :  { %5649 = vmatpush3.bf16.msra.mxu1 %v6199_v29 }
 0xbf2   :  { %5656 = vmatprep.subr.bf16.mxu1 %v6010_v2 }
 0xcb7   :  { %v1540_v49 = vpop.f32.mrb[16].mxu1  ;;  %v1610_v40 = vpop.f32.mrb[22].mxu0 }
 0xcb8   :  { %v1614_v41 = vadd.f32 %v1540_v49, %v6246_v47  ;;  %1622 = vrot.lane.b32.xlu0 %v1610_v40, %s6014_s27  ;;  %v5131_v43 = vpop.f32.mrb[17].mxu1  ;;  %v5142_v44 = vpop.f32.mrb[23].mxu0 }
 0xcba   :  { %v4589_v46 = vmul.f32 -1.442695, %v1614_v41 }
 0xcbc   :  { %5898 = vpow2.f32 %v4589_v46 }
 0xcbf   :  { %v1698_v48 = vpop.f32.mrb[18].mxu1 }
 0xcc0   :  { %v5153_v50 = vpop.f32.mrb[19].mxu1  ;;  %v1699_v54 = vadd.f32 %v6257_v60, %v1698_v48  ;;  %v2215_v48 = vld [vmem:[%s6906_s7 + $0x10] sm:$0xff] }
 0xcc6   :  { %v5899_v51 = vpop.eup %5898 }
 0xcc7   :  { %v1618_v52 = vadd.f32 1.0, %v5899_v51 }
 0xcc9   :  { %5900 = vrcp.f32 %v1618_v52  ;;  %v2345_v52 = vld [vmem:[%s6907_s9] sm:$0xff] }
 0xcd3   :  { %v5901_v56 = vpop.eup %5900 }
 0xcd4   :  { %v1702_v57 = vmul.f32 %v5901_v56, %v1699_v54  ;;  %v2346_v54 = vld [vmem:[%s6907_s9 + $0x8] sm:$0xff]  ;;  %v2348_v56 = vld [vmem:[%s6907_s9 + $0x18] sm:$0xff] }
 0xcd6   :  { %1704 = vrot.lane.b32.xlu1 %v1702_v57, %s6013_s26 }
 0xd2a   :  { %v1623_v62 = vpop.permute.xlu0 %1622 }
 0xd2b   :  { %v1625_v63 = vadd.f32 %v1623_v62, %v6246_v47 }
 0xd2d   :  { %v4590_v0 = vmul.f32 -1.442695, %v1625_v63 }
 0xd48   :  { %v1705_v35 = vpop.permute.xlu1 %1704 }
 0xd49   :  { %v1707_v59 = vadd.f32 %v1705_v35, %v6246_v47  ;;  %v4615_v35 = vld [vmem:[%s6907_s9 + $0x38] sm:$0xff] }
 0xd4b   :  { %5902 = vtanh.f32 %v1707_v59 }
 0xd4c   :  { %5904 = vpow2.f32 %v4590_v0 }
 0xd55   :  { %v5903_v61 = vpop.eup %5902 }
 0xd56   :  { %1711 = vrot.lane.b32.xlu1 %v5903_v61, %s6015_s23  ;;  %v5905_v1 = vpop.eup %5904 }
 0xd57   :  { %v1629_v42 = vadd.f32 1.0, %v5905_v1 }
 0xd59   :  { %5906 = vrcp.f32 %v1629_v42 }
 0xd63   :  { %v5907_v4 = vpop.eup %5906 }
 0xd64   :  { %v1709_v5 = vsub.f32 1.0, %v5907_v4  ;;  %v1715_v9 = vmul.f32 %v5907_v4, %v1468_v38 }
 0xdc8   :  { %v1712_v6 = vpop.permute.xlu1 %1711 }
 0xdc9   :  { %v1714_v10 = vmul.f32 %v1712_v6, %v1709_v5 }
 0xdcb   :  { %v1716_v11 = vadd.f32 %v1715_v9, %v1714_v10 }
 0xdcd   :  { %1718 = vrot.lane.b32.xlu0 %v1716_v11, %s6015_s23 }
 0xe3f   :  { %v6436_v12 = vpop.permute.xlu0 %1718 }
 0xe40   :  { %5163 = vmatmul.mubr.msk.f32.vlgmr.msra.gmra.mrb[24].mxu0 %vm227_vm3, %v6436_v12  ;;  %5174 = vmatmul.mubr.msk.f32.vlgmr.msra.gmra.mrb[20].mxu1 %vm227_vm3, %v6436_v12 }
 0xe41   :  { %5652 = vmatpush3.bf16.msra.mxu0 %v6147_v16  ;;  %5184 = vmatprep.mubr.msk.f32.mxu0 %vm6011_vm1, %v6012_v7 }
 0xe42   :  { %5653 = vmatprep.subr.bf16.mxu0 %v6010_v2  ;;  %5658 = vmatpush3.bf16.msra.mxu1 %v6121_v8 }
 0xe43   :  { %5659 = vmatprep.subr.bf16.mxu1 %v6010_v2  ;;  %5195 = vmatprep.mubr.msk.f32.mxu1 %vm6011_vm1, %v6012_v7 }
 0xe45   :  { %5655 = vmatpush3.bf16.msra.mxu0 %v6180_v25 }
 0xe46   :  { %5662 = vmatprep.subr.bf16.mxu0 %v6010_v2  ;;  %5661 = vmatpush3.bf16.msra.mxu1 %v6140_v14 }
 0xe47   :  { %5668 = vmatprep.subr.bf16.mxu1 %v6010_v2 }
 0xe48   :  { %5185 = vmatmul.mubr.msk.f32.vlgmr.msra.gmra.mrb[26].mxu0 %vm227_vm3, %v6436_v12 }
 0xe49   :  { %5664 = vmatpush3.bf16.msra.mxu0 %v6173_v23  ;;  %5206 = vmatprep.mubr.msk.f32.mxu0 %vm6011_vm1, %v6012_v7 }
 0xe4a   :  { %5665 = vmatprep.subr.bf16.mxu0 %v6010_v2 }
 0xe4d   :  { %5667 = vmatpush3.bf16.msra.mxu0 %v6199_v29 }
 0xe4e   :  { %5675 = vmatprep.subr.bf16.mxu0 %v5674_v45 }
 0xf13   :  { %v1788_v8 = vpop.f32.mrb[24].mxu0  ;;  %v1858_v47 = vpop.f32.mrb[20].mxu1 }
 0xf14   :  { %v1862_v13 = vadd.f32 %v1788_v8, %v6252_v55  ;;  %v5164_v15 = vpop.f32.mrb[25].mxu0  ;;  %1870 = vrot.lane.b32.xlu0 %v1858_v47, %s6014_s27  ;;  %v5175_v14 = vpop.f32.mrb[21].mxu1 }
 0xf16   :  { %v4594_v17 = vmul.f32 -1.442695, %v1862_v13 }
 0xf18   :  { %5908 = vpow2.f32 %v4594_v17 }
 0xf1b   :  { %v1946_v18 = vpop.f32.mrb[26].mxu0 }
 0xf1c   :  { %v5186_v19 = vpop.f32.mrb[27].mxu0  ;;  %v1947_v22 = vadd.f32 %v6257_v60, %v1946_v18 }
 0xf22   :  { %v5909_v23 = vpop.eup %5908 }
 0xf23   :  { %v1866_v21 = vadd.f32 1.0, %v5909_v23 }
 0xf25   :  { %5910 = vrcp.f32 %v1866_v21 }
 0xf2f   :  { %v5911_v24 = vpop.eup %5910 }
 0xf30   :  { %v1950_v26 = vmul.f32 %v5911_v24, %v1947_v22 }
 0xf32   :  { %1952 = vrot.lane.b32.xlu1 %v1950_v26, %s6013_s26 }
 0xf86   :  { %v1871_v33 = vpop.permute.xlu0 %1870 }
 0xf87   :  { %v1873_v34 = vadd.f32 %v1871_v33, %v6252_v55 }
 0xf89   :  { %v4595_v36 = vmul.f32 -1.442695, %v1873_v34 }
 0xfa4   :  { %v1953_v29 = vpop.permute.xlu1 %1952 }
 0xfa5   :  { %v1955_v27 = vadd.f32 %v1953_v29, %v6252_v55  ;;  %v2216_v55 = vld [vmem:[%s6906_s7 + $0x18] sm:$0xff]  ;;  %v4616_v29 = vld [vmem:[%s6907_s9 + $0x40] sm:$0xff] }
 0xfa6   :  { %v5678_v51 = vpack.c.bf16 %v2216_v55, %v2215_v48 }
 0xfa7   :  { %5912 = vtanh.f32 %v1955_v27  ;;  %v4617_v27 = vld [vmem:[%s6907_s9 + $0x48] sm:$0xff] }
 0xfa8   :  { %5914 = vpow2.f32 %v4595_v36  ;;  %v6591_v28 = vpack.c.bf16 %v4617_v27, %v4616_v29 }
 0xfb1   :  { %v5913_v32 = vpop.eup %5912 }
 0xfb2   :  { %1959 = vrot.lane.b32.xlu1 %v5913_v32, %s6015_s23  ;;  %v5915_v37 = vpop.eup %5914 }
 0xfb3   :  { %v1877_v38 = vadd.f32 1.0, %v5915_v37 }
 0xfb5   :  { %5916 = vrcp.f32 %v1877_v38 }
 0xfbf   :  { %v5917_v49 = vpop.eup %5916 }
 0xfc0   :  { %v1957_v40 = vsub.f32 1.0, %v5917_v49  ;;  %v1963_v44 = vmul.f32 %v5917_v49, %v1716_v11 }
0x1024   :  { %v1960_v41 = vpop.permute.xlu1 %1959 }
0x1025   :  { %v1962_v43 = vmul.f32 %v1960_v41, %v1957_v40 }
0x1027   :  { %v6474_v46 = vadd.f32 %v1963_v44, %v1962_v43 }
0x1029   :  { %1966 = vrot.lane.b32.xlu0 %v6474_v46, %s6015_s23 }
0x109b   :  { %v1967_v50 = vpop.permute.xlu0 %1966 }
0x109c   :  { %5196 = vmatmul.mubr.msk.f32.vlgmr.msra.gmra.mrb[22].mxu1 %vm227_vm3, %v1967_v50  ;;  %5207 = vmatmul.mubr.msk.f32.vlgmr.msra.gmra.mrb[28].mxu0 %vm227_vm3, %v1967_v50 }
0x109d   :  { %5670 = vmatpush3.bf16.msra.mxu1 %v6147_v16  ;;  %5677 = vmatpush3.bf16.msra.mxu0 %v5674_v45  ;;  %v6499_v16 = vpack.c.bf16 %v2346_v54, %v2345_v52 }
0x109e   :  { %5228 = vmatprep.mubr.msk.f32.mxu0 %vm227_vm3, %v6266_v20  ;;  %5671 = vmatprep.subr.bf16.mxu1 %v6010_v2  ;;  %v2347_v20 = vld [vmem:[%s6907_s9 + $0x10] sm:$0xff] }
0x109f   :  { %5679 = vmatprep.subr.bf16.mxu0 %v5678_v51  ;;  %5217 = vmatprep.mubr.msk.f32.mxu1 %vm6011_vm1, %v6012_v7 }
0x10a1   :  { %5673 = vmatpush3.bf16.msra.mxu1 %v6180_v25  ;;  %5681 = vmatpush3.bf16.msra.mxu0 %v5678_v51  ;;  %v6515_v25 = vpack.c.bf16 %v2348_v56, %v2347_v20  ;;  %v6632_v56 = vld [vmem:[%s6910_s10] ss:$0 sm:$0xff] }
0x10a2   :  { %5682 = vmatprep.subr.bf16.mxu1 %v6010_v2  ;;  %5694 = vmatprep.subr.bf16.mxu0 %v6010_v2 }
0x10a4   :  { %5218 = vmatmul.mubr.msk.f32.vlgmr.msra.gmra.mrb[24].mxu1 %vm227_vm3, %v1967_v50  ;;  %5229 = vmatmul.mubr.msk.f32.vlgmr.msra.gmra.mrb[30].mxu0 %vm227_vm3, %v6300_v58  ;;  %v6528_v58 = vld [vmem:[%s6908_s11] sm:$0xff] }
0x10a5   :  { %5231 = vmatprep.mubr.msk.f32.mxu0 %vm227_vm3, %v6334_v31  ;;  %5684 = vmatpush3.bf16.msra.mxu1 %v6499_v16  ;;  %v4612_v31 = vld [vmem:[%s6907_s9 + $0x20] sm:$0xff] }
0x10a6   :  { %5685 = vmatprep.subr.bf16.mxu1 %v6010_v2  ;;  %5248 = vmatprep.mubr.msk.f32.mxu1 %vm6011_vm1, %v6012_v7 }
0x10a7   :  { %5696 = vmatpush3.bf16.msra.mxu0 %v6591_v28 }
0x10a8   :  { %5232 = vmatmul.mubr.msk.f32.gmra.mrb[32].mxu0 %vm227_vm3, %v6368_v3  ;;  %v4613_v3 = vld [vmem:[%s6907_s9 + $0x28] sm:$0xff]  ;;  %5697 = vmatprep.subr.bf16.mxu0 %v6010_v2 }
0x10a9   :  { %5234 = vmatprep.mubr.msk.f32.mxu0 %vm227_vm3, %v6402_v39  ;;  %5687 = vmatpush3.bf16.msra.mxu1 %v6515_v25  ;;  %v4614_v39 = vld [vmem:[%s6907_s9 + $0x30] sm:$0xff]  ;;  %v6547_v57 = vpack.c.bf16 %v4613_v3, %v4612_v31 }
0x10aa   :  { %5688 = vmatprep.subr.bf16.mxu1 %v6010_v2  ;;  %v6553_v59 = vpack.c.bf16 %v4615_v35, %v4614_v39 }
0x10ac   :  { %5235 = vmatmul.mubr.msk.f32.gmra.mrb[34].mxu0 %vm227_vm3, %v6436_v12  ;;  %5249 = vmatmul.mubr.msk.f32.vlgmr.msra.gmra.mrb[26].mxu1 %vm227_vm3, %v6528_v58 }
0x10ad   :  { %5237 = vmatprep.mubr.msk.f32.mxu0 %vm227_vm3, %v1967_v50  ;;  %5259 = vmatprep.mubr.msk.f32.mxu1 %vm6011_vm1, %v6012_v7 }
0x10ae   :  { %5690 = vmatpush3.bf16.msra.mxu1 %v6547_v57 }
0x10af   :  { %5691 = vmatprep.subr.bf16.mxu1 %v6010_v2 }
0x10b2   :  { %5693 = vmatpush3.bf16.msra.mxu1 %v6553_v59 }
0x10b3   :  { %5700 = vmatprep.subr.bf16.mxu1 %v6010_v2 }
0x10b5   :  { %5260 = vmatmul.mubr.msk.f32.vlgmr.msra.gmra.mrb[28].mxu1 %vm227_vm3, %v6528_v58 }
0x10b6   :  { %5702 = vmatpush3.bf16.msra.mxu1 %v6499_v16  ;;  %5281 = vmatprep.mubr.msk.f32.mxu1 %vm6011_vm1, %v6012_v7 }
0x10b7   :  { %5703 = vmatprep.subr.bf16.mxu1 %v6010_v2 }
0x10ba   :  { %5705 = vmatpush3.bf16.msra.mxu1 %v6515_v25 }
0x10bb   :  { %5712 = vmatprep.subr.bf16.mxu1 %v6010_v2 }
0x116f   :  { %v2036_v61 = vpop.f32.mrb[22].mxu1  ;;  %v2106_v62 = vpop.f32.mrb[28].mxu0 }
0x1170   :  { %v2110_v63 = vadd.f32 %v2036_v61, %v6250_v53  ;;  %2118 = vrot.lane.b32.xlu0 %v2106_v62, %s6014_s27  ;;  %v5197_v0 = vpop.f32.mrb[23].mxu1  ;;  %v5208_v1 = vpop.f32.mrb[29].mxu0 }
0x1172   :  { %v4599_v42 = vmul.f32 -1.442695, %v2110_v63 }
0x1174   :  { %5918 = vpow2.f32 %v4599_v42 }
0x1177   :  { %v2194_v4 = vpop.f32.mrb[24].mxu1  ;;  %v6568_v5 = vpop.f32.mrb[30].mxu0 }
0x1178   :  { %v5219_v6 = vpop.f32.mrb[25].mxu1  ;;  %v2295_v9 = vpop.f32.mrb[31].mxu0  ;;  %v2195_v17 = vadd.f32 %v6257_v60, %v2194_v4  ;;  %v4618_v60 = vld [vmem:[%s6907_s9 + $0x50] sm:$0xff] }
0x1179   :  { %v6597_v45 = vpack.c.bf16 %v4619_v30, %v4618_v60 }
0x117b   :  { %v6570_v10 = vpop.f32.mrb[32].mxu0  ;;  %5699 = vmatpush3.bf16.msra.mxu0 %v6597_v45 }
0x117c   :  { %v6572_v11 = vpop.f32.mrb[33].mxu0  ;;  %5706 = vmatprep.subr.bf16.mxu0 %v6010_v2 }
0x117e   :  { %v5919_v12 = vpop.eup %5918 }
0x117f   :  { %v2114_v8 = vadd.f32 1.0, %v5919_v12  ;;  %v6574_v47 = vpop.f32.mrb[34].mxu0  ;;  %v2429_v13 = vpop.f32.mrb[26].mxu1 }
0x1180   :  { %v6576_v15 = vpop.f32.mrb[35].mxu0  ;;  %v5250_v14 = vpop.f32.mrb[27].mxu1 }
0x1181   :  { %5920 = vrcp.f32 %v2114_v8 }
0x1188   :  { %v2499_v22 = vpop.f32.mrb[28].mxu1 }
0x1189   :  { %v5261_v24 = vpop.f32.mrb[29].mxu1 }
0x118b   :  { %v5921_v18 = vpop.eup %5920 }
0x118c   :  { %v2198_v19 = vmul.f32 %v5921_v18, %v2195_v17 }
0x118e   :  { %2200 = vrot.lane.b32.xlu1 %v2198_v19, %s6013_s26 }
0x11e2   :  { %v2119_v32 = vpop.permute.xlu0 %2118 }
0x11e3   :  { %v2121_v33 = vadd.f32 %v2119_v32, %v6250_v53 }
0x11e5   :  { %v4600_v34 = vmul.f32 -1.442695, %v2121_v33 }
0x1200   :  { %v2201_v23 = vpop.permute.xlu1 %2200 }
0x1201   :  { %v2203_v21 = vadd.f32 %v2201_v23, %v6250_v53 }
0x1203   :  { %5922 = vtanh.f32 %v2203_v21 }
0x1204   :  { %5924 = vpow2.f32 %v4600_v34 }
0x120d   :  { %v5923_v26 = vpop.eup %5922 }
0x120e   :  { %2207 = vrot.lane.b32.xlu1 %v5923_v26, %s6015_s23  ;;  %v5925_v36 = vpop.eup %5924 }
0x120f   :  { %v2125_v37 = vadd.f32 1.0, %v5925_v36 }
0x1211   :  { %5926 = vrcp.f32 %v2125_v37 }
0x121b   :  { %v5927_v38 = vpop.eup %5926 }
0x121c   :  { %v2205_v49 = vsub.f32 1.0, %v5927_v38  ;;  %v2211_v41 = vmul.f32 %v5927_v38, %v6474_v46  ;;  %v6622_v46 = vld [vmem:[%s6909_s8] ss:$0 sm:$0xff] }
0x121d   :  { %v2296_v48 = vadd.f32 %v6622_v46, %v2295_v9  ;;  %v2301_v23 = vadd.f32 %v6568_v5, %v6622_v46 }
0x121f   :  { %v2503_v55 = vadd.f32 %v2429_v13, %v2296_v48 }
0x1221   :  { %v4622_v50 = vmul.f32 -1.442695, %v2503_v55 }
0x1223   :  { %5928 = vpow2.f32 %v4622_v50 }
0x122d   :  { %v5929_v51 = vpop.eup %5928 }
0x122e   :  { %v2507_v52 = vadd.f32 1.0, %v5929_v51 }
0x1230   :  { %5930 = vrcp.f32 %v2507_v52 }
0x123a   :  { %v5931_v39 = vpop.eup %5930 }
0x1280   :  { %v2208_v40 = vpop.permute.xlu1 %2207 }
0x1281   :  { %v2210_v43 = vmul.f32 %v2208_v40, %v2205_v49 }
0x1283   :  { %v2212_v44 = vadd.f32 %v2211_v41, %v2210_v43 }
0x1285   :  { %2225 = vrot.lane.b32.xlu0 %v2212_v44, %s6015_s23 }
0x1289   :  { %2511 = vrot.lane.b32.xlu0 %v2499_v22, %s6014_s27 }
0x128d   :  { %2604 = vrot.lane.b32.xlu0 %v6528_v58, %s6014_s27 }
0x12f7   :  { %v2226_v53 = vpop.permute.xlu0 %2225 }
0x12f8   :  { %5238 = vmatmul.mubr.msk.f32.gmra.mrb[36].mxu0 %vm227_vm3, %v2226_v53 }
0x12f9   :  { %5270 = vmatprep.mubr.msk.f32.mxu0 %vm6011_vm1, %v6012_v7 }
0x12fb   :  { %v2512_v0 = vpop.permute.xlu0 %2511 }
0x12fc   :  { %5271 = vmatmul.mubr.msk.f32.vlgmr.msra.gmra.mrb[38].mxu0 %vm227_vm3, %v6528_v58  ;;  %v2514_v1 = vadd.f32 %v2512_v0, %v2296_v48 }
0x12fd   :  { %5708 = vmatpush3.bf16.msra.mxu0 %v6547_v57  ;;  %5292 = vmatprep.mubr.msk.f32.mxu0 %vm6011_vm1, %v6012_v7 }
0x12fe   :  { %5709 = vmatprep.subr.bf16.mxu0 %v6010_v2  ;;  %v4623_v42 = vmul.f32 -1.442695, %v2514_v1 }
0x12ff   :  { %v2605_v12 = vpop.permute.xlu0 %2604 }
0x1301   :  { %5711 = vmatpush3.bf16.msra.mxu0 %v6553_v59 }
0x1302   :  { %5718 = vmatprep.subr.bf16.mxu0 %v6010_v2 }
0x13cb   :  { %v6625_v54 = vpop.f32.mrb[36].mxu0 }
0x13cc   :  { %v6627_v20 = vpop.f32.mrb[37].mxu0 }
0x13cf   :  { %v2587_v58 = vpop.f32.mrb[38].mxu0 }
0x13d0   :  { %v2588_v31 = vadd.f32 %v6632_v56, %v2587_v58  ;;  %v5272_v3 = vpop.f32.mrb[39].mxu0 }
0x13d1   :  { %v2306_v3 = vadd.f32 %v6622_v46, %v6572_v11 }
0x13d2   :  { %v2591_v35 = vmul.f32 %v5931_v39, %v2588_v31 }
0x13d4   :  { %2593 = vrot.lane.b32.xlu1 %v2591_v35, %s6013_s26 }
0x1446   :  { %v2594_v61 = vpop.permute.xlu1 %2593 }
0x1447   :  { %v2596_v62 = vadd.f32 %v2594_v61, %v2296_v48 }
0x1449   :  { %5932 = vtanh.f32 %v2596_v62 }
0x144a   :  { %5934 = vpow2.f32 %v4623_v42 }
0x1453   :  { %v5933_v63 = vpop.eup %5932 }
0x1454   :  { %2600 = vrot.lane.b32.xlu1 %v5933_v63, %s6015_s23  ;;  %v5935_v4 = vpop.eup %5934 }
0x1455   :  { %v2518_v6 = vadd.f32 1.0, %v5935_v4 }
0x1457   :  { %5936 = vrcp.f32 %v2518_v6 }
0x1461   :  { %v5937_v9 = vpop.eup %5936 }
0x1462   :  { %v2598_v8 = vsub.f32 1.0, %v5937_v9  ;;  %v2607_v14 = vmul.f32 %v5937_v9, %v2605_v12 }
0x14c6   :  { %v2601_v13 = vpop.permute.xlu1 %2600 }
0x14c7   :  { %v2603_v17 = vmul.f32 %v2601_v13, %v2598_v8 }
0x14c9   :  { %v6637_v18 = vadd.f32 %v2607_v14, %v2603_v17 }
0x14cb   :  { %2612 = vrot.lane.b32.xlu1 %v6637_v18, %s6015_s23 }
0x153d   :  { %v2613_v19 = vpop.permute.xlu1 %2612 }
0x153e   :  { %5282 = vmatmul.mubr.msk.f32.vlgmr.msra.gmra.mrb[30].mxu1 %vm227_vm3, %v2613_v19  ;;  %5293 = vmatmul.mubr.msk.f32.vlgmr.msra.gmra.mrb[40].mxu0 %vm227_vm3, %v2613_v19 }
0x153f   :  { %5714 = vmatpush3.bf16.msra.mxu1 %v6591_v28  ;;  %5303 = vmatprep.mubr.msk.f32.mxu1 %vm6011_vm1, %v6012_v7 }
0x1540   :  { %5715 = vmatprep.subr.bf16.mxu1 %v6010_v2  ;;  %5720 = vmatpush3.bf16.msra.mxu0 %v6499_v16 }
0x1541   :  { %5721 = vmatprep.subr.bf16.mxu0 %v6010_v2  ;;  %5314 = vmatprep.mubr.msk.f32.mxu0 %vm6011_vm1, %v6012_v7 }
0x1543   :  { %5717 = vmatpush3.bf16.msra.mxu1 %v6597_v45 }
0x1544   :  { %5724 = vmatprep.subr.bf16.mxu1 %v6010_v2  ;;  %5723 = vmatpush3.bf16.msra.mxu0 %v6515_v25 }
0x1545   :  { %5730 = vmatprep.subr.bf16.mxu0 %v6010_v2 }
0x1546   :  { %5304 = vmatmul.mubr.msk.f32.vlgmr.msra.gmra.mrb[32].mxu1 %vm227_vm3, %v2613_v19 }
0x1547   :  { %5726 = vmatpush3.bf16.msra.mxu1 %v6547_v57  ;;  %5325 = vmatprep.mubr.msk.f32.mxu1 %vm6011_vm1, %v6012_v7 }
0x1548   :  { %5727 = vmatprep.subr.bf16.mxu1 %v6010_v2 }
0x154b   :  { %5729 = vmatpush3.bf16.msra.mxu1 %v6553_v59 }
0x154c   :  { %5736 = vmatprep.subr.bf16.mxu1 %v6010_v2 }
0x1611   :  { %v2682_v21 = vpop.f32.mrb[30].mxu1  ;;  %v2752_v22 = vpop.f32.mrb[40].mxu0 }
0x1612   :  { %v2756_v24 = vadd.f32 %v2682_v21, %v2301_v23  ;;  %2764 = vrot.lane.b32.xlu1 %v2752_v22, %s6014_s27  ;;  %v5283_v26 = vpop.f32.mrb[31].mxu1  ;;  %v5294_v29 = vpop.f32.mrb[41].mxu0 }
0x1614   :  { %v4627_v27 = vmul.f32 -1.442695, %v2756_v24 }
0x1616   :  { %5938 = vpow2.f32 %v4627_v27 }
0x1619   :  { %v2840_v60 = vpop.f32.mrb[32].mxu1 }
0x161a   :  { %v5305_v30 = vpop.f32.mrb[33].mxu1  ;;  %v2841_v34 = vadd.f32 %v6632_v56, %v2840_v60 }
0x1620   :  { %v5939_v32 = vpop.eup %5938 }
0x1621   :  { %v2760_v33 = vadd.f32 1.0, %v5939_v32 }
0x1623   :  { %5940 = vrcp.f32 %v2760_v33  ;;  %v2311_v33 = vadd.f32 %v6570_v10, %v6622_v46 }
0x162d   :  { %v5941_v36 = vpop.eup %5940 }
0x162e   :  { %v2844_v37 = vmul.f32 %v5941_v36, %v2841_v34 }
0x1630   :  { %2846 = vrot.lane.b32.xlu0 %v2844_v37, %s6013_s26 }
0x1684   :  { %v2765_v40 = vpop.permute.xlu1 %2764 }
0x1685   :  { %v2767_v41 = vadd.f32 %v2765_v40, %v2301_v23 }
0x1687   :  { %v4628_v43 = vmul.f32 -1.442695, %v2767_v41 }
0x16a2   :  { %v2847_v5 = vpop.permute.xlu0 %2846 }
0x16a3   :  { %v2849_v38 = vadd.f32 %v2847_v5, %v2301_v23 }
0x16a5   :  { %5942 = vtanh.f32 %v2849_v38 }
0x16a6   :  { %5944 = vpow2.f32 %v4628_v43 }
0x16af   :  { %v5943_v49 = vpop.eup %5942 }
0x16b0   :  { %2853 = vrot.lane.b32.xlu0 %v5943_v49, %s6015_s23  ;;  %v5945_v44 = vpop.eup %5944 }
0x16b1   :  { %v2771_v53 = vadd.f32 1.0, %v5945_v44 }
0x16b3   :  { %5946 = vrcp.f32 %v2771_v53 }
0x16bd   :  { %v5947_v48 = vpop.eup %5946 }
0x16be   :  { %v2851_v55 = vsub.f32 1.0, %v5947_v48  ;;  %v2857_v51 = vmul.f32 %v5947_v48, %v6637_v18 }
0x1722   :  { %v2854_v50 = vpop.permute.xlu0 %2853 }
0x1723   :  { %v2856_v52 = vmul.f32 %v2854_v50, %v2851_v55 }
0x1725   :  { %v6669_v58 = vadd.f32 %v2857_v51, %v2856_v52 }
0x1727   :  { %2862 = vrot.lane.b32.xlu1 %v6669_v58, %s6015_s23 }
0x1799   :  { %v2863_v31 = vpop.permute.xlu1 %2862 }
0x179a   :  { %5315 = vmatmul.mubr.msk.f32.vlgmr.msra.gmra.mrb[42].mxu0 %vm227_vm3, %v2863_v31  ;;  %5326 = vmatmul.mubr.msk.f32.vlgmr.msra.gmra.mrb[34].mxu1 %vm227_vm3, %v2863_v31 }
0x179b   :  { %5732 = vmatpush3.bf16.msra.mxu0 %v6591_v28  ;;  %5336 = vmatprep.mubr.msk.f32.mxu0 %vm6011_vm1, %v6012_v7 }
0x179c   :  { %5733 = vmatprep.subr.bf16.mxu0 %v6010_v2  ;;  %5738 = vmatpush3.bf16.msra.mxu1 %v6499_v16 }
0x179d   :  { %5739 = vmatprep.subr.bf16.mxu1 %v6010_v2  ;;  %5347 = vmatprep.mubr.msk.f32.mxu1 %vm6011_vm1, %v6012_v7 }
0x179f   :  { %5735 = vmatpush3.bf16.msra.mxu0 %v6597_v45 }
0x17a0   :  { %5742 = vmatprep.subr.bf16.mxu0 %v6010_v2  ;;  %5741 = vmatpush3.bf16.msra.mxu1 %v6515_v25 }
0x17a1   :  { %5748 = vmatprep.subr.bf16.mxu1 %v6010_v2 }
0x17a2   :  { %5337 = vmatmul.mubr.msk.f32.vlgmr.msra.gmra.mrb[44].mxu0 %vm227_vm3, %v2863_v31 }
0x17a3   :  { %5744 = vmatpush3.bf16.msra.mxu0 %v6547_v57  ;;  %5358 = vmatprep.mubr.msk.f32.mxu0 %vm6011_vm1, %v6012_v7 }
0x17a4   :  { %5745 = vmatprep.subr.bf16.mxu0 %v6010_v2 }
0x17a7   :  { %5747 = vmatpush3.bf16.msra.mxu0 %v6553_v59 }
0x17a8   :  { %5754 = vmatprep.subr.bf16.mxu0 %v6010_v2 }
0x186d   :  { %v2932_v39 = vpop.f32.mrb[42].mxu0  ;;  %v3002_v35 = vpop.f32.mrb[34].mxu1 }
0x186e   :  { %v3006_v61 = vadd.f32 %v2932_v39, %v2306_v3  ;;  %v5316_v62 = vpop.f32.mrb[43].mxu0  ;;  %3014 = vrot.lane.b32.xlu1 %v3002_v35, %s6014_s27  ;;  %v5327_v63 = vpop.f32.mrb[35].mxu1 }
0x1870   :  { %v4632_v0 = vmul.f32 -1.442695, %v3006_v61 }
0x1872   :  { %5948 = vpow2.f32 %v4632_v0 }
0x1875   :  { %v3090_v1 = vpop.f32.mrb[44].mxu0 }
0x1876   :  { %v5338_v42 = vpop.f32.mrb[45].mxu0  ;;  %v3091_v9 = vadd.f32 %v6632_v56, %v3090_v1 }
0x187c   :  { %v5949_v4 = vpop.eup %5948 }
0x187d   :  { %v3010_v6 = vadd.f32 1.0, %v5949_v4 }
0x187f   :  { %5950 = vrcp.f32 %v3010_v6  ;;  %v2316_v6 = vadd.f32 %v6622_v46, %v6576_v15 }
0x1889   :  { %v5951_v12 = vpop.eup %5950 }
0x188a   :  { %v3094_v8 = vmul.f32 %v5951_v12, %v3091_v9 }
0x188c   :  { %3096 = vrot.lane.b32.xlu0 %v3094_v8, %s6013_s26 }
0x18e0   :  { %v3015_v17 = vpop.permute.xlu1 %3014 }
0x18e1   :  { %v3017_v19 = vadd.f32 %v3015_v17, %v2306_v3 }
0x18e3   :  { %v4633_v23 = vmul.f32 -1.442695, %v3017_v19 }
0x18fe   :  { %v3097_v11 = vpop.permute.xlu0 %3096 }
0x18ff   :  { %v3099_v13 = vadd.f32 %v3097_v11, %v2306_v3 }
0x1901   :  { %5952 = vtanh.f32 %v3099_v13 }
0x1902   :  { %5954 = vpow2.f32 %v4633_v23 }
0x190b   :  { %v5953_v14 = vpop.eup %5952 }
0x190c   :  { %3103 = vrot.lane.b32.xlu0 %v5953_v14, %s6015_s23  ;;  %v5955_v21 = vpop.eup %5954 }
0x190d   :  { %v3021_v22 = vadd.f32 1.0, %v5955_v21 }
0x190f   :  { %5956 = vrcp.f32 %v3021_v22 }
0x1919   :  { %v5957_v24 = vpop.eup %5956 }
0x191a   :  { %v3101_v26 = vsub.f32 1.0, %v5957_v24  ;;  %v3107_v60 = vmul.f32 %v5957_v24, %v6669_v58 }
0x197e   :  { %v3104_v29 = vpop.permute.xlu0 %3103 }
0x197f   :  { %v3106_v27 = vmul.f32 %v3104_v29, %v3101_v26 }
0x1981   :  { %v6701_v30 = vadd.f32 %v3107_v60, %v3106_v27 }
0x1983   :  { %3112 = vrot.lane.b32.xlu1 %v6701_v30, %s6015_s23 }
0x19f5   :  { %v3113_v32 = vpop.permute.xlu1 %3112 }
0x19f6   :  { %5348 = vmatmul.mubr.msk.f32.vlgmr.msra.gmra.mrb[36].mxu1 %vm227_vm3, %v3113_v32  ;;  %5359 = vmatmul.mubr.msk.f32.vlgmr.msra.gmra.mrb[46].mxu0 %vm227_vm3, %v3113_v32 }
0x19f7   :  { %5750 = vmatpush3.bf16.msra.mxu1 %v6591_v28  ;;  %5369 = vmatprep.mubr.msk.f32.mxu1 %vm6011_vm1, %v6012_v7 }
0x19f8   :  { %5751 = vmatprep.subr.bf16.mxu1 %v6010_v2  ;;  %5756 = vmatpush3.bf16.msra.mxu0 %v6499_v16 }
0x19f9   :  { %5757 = vmatprep.subr.bf16.mxu0 %v6010_v2  ;;  %5380 = vmatprep.mubr.msk.f32.mxu0 %vm6011_vm1, %v6012_v7 }
0x19fb   :  { %5753 = vmatpush3.bf16.msra.mxu1 %v6597_v45 }
0x19fc   :  { %5760 = vmatprep.subr.bf16.mxu1 %v6010_v2  ;;  %5759 = vmatpush3.bf16.msra.mxu0 %v6515_v25 }
0x19fd   :  { %5766 = vmatprep.subr.bf16.mxu0 %v6010_v2 }
0x19fe   :  { %5370 = vmatmul.mubr.msk.f32.vlgmr.msra.gmra.mrb[38].mxu1 %vm227_vm3, %v3113_v32 }
0x19ff   :  { %5762 = vmatpush3.bf16.msra.mxu1 %v6547_v57  ;;  %5391 = vmatprep.mubr.msk.f32.mxu1 %vm6011_vm1, %v6012_v7 }
0x1a00   :  { %5763 = vmatprep.subr.bf16.mxu1 %v6010_v2 }
0x1a03   :  { %5765 = vmatpush3.bf16.msra.mxu1 %v6553_v59 }
0x1a04   :  { %5772 = vmatprep.subr.bf16.mxu1 %v6010_v2 }
0x1ac9   :  { %v3182_v34 = vpop.f32.mrb[36].mxu1  ;;  %v3252_v36 = vpop.f32.mrb[46].mxu0 }
0x1aca   :  { %v3256_v37 = vadd.f32 %v3182_v34, %v2311_v33  ;;  %3264 = vrot.lane.b32.xlu1 %v3252_v36, %s6014_s27  ;;  %v5349_v5 = vpop.f32.mrb[37].mxu1  ;;  %v5360_v38 = vpop.f32.mrb[47].mxu0 }
0x1acc   :  { %v4637_v49 = vmul.f32 -1.442695, %v3256_v37 }
0x1ace   :  { %5958 = vpow2.f32 %v4637_v49 }
0x1ad1   :  { %v3340_v40 = vpop.f32.mrb[38].mxu1 }
0x1ad2   :  { %v5371_v41 = vpop.f32.mrb[39].mxu1  ;;  %v3341_v53 = vadd.f32 %v6632_v56, %v3340_v40 }
0x1ad8   :  { %v5959_v43 = vpop.eup %5958 }
0x1ad9   :  { %v3260_v44 = vadd.f32 1.0, %v5959_v43 }
0x1adb   :  { %5960 = vrcp.f32 %v3260_v44  ;;  %v2321_v44 = vadd.f32 %v6574_v47, %v6622_v46 }
0x1ae5   :  { %v5961_v48 = vpop.eup %5960 }
0x1ae6   :  { %v3344_v55 = vmul.f32 %v5961_v48, %v3341_v53 }
0x1ae8   :  { %3346 = vrot.lane.b32.xlu0 %v3344_v55, %s6013_s26 }
0x1b3c   :  { %v3265_v52 = vpop.permute.xlu1 %3264 }
0x1b3d   :  { %v3267_v31 = vadd.f32 %v3265_v52, %v2311_v33 }
0x1b3f   :  { %v4638_v3 = vmul.f32 -1.442695, %v3267_v31 }
0x1b5a   :  { %v3347_v10 = vpop.permute.xlu0 %3346 }
0x1b5b   :  { %v3349_v50 = vadd.f32 %v3347_v10, %v2311_v33 }
0x1b5d   :  { %5962 = vtanh.f32 %v3349_v50 }
0x1b5e   :  { %5964 = vpow2.f32 %v4638_v3 }
0x1b67   :  { %v5963_v51 = vpop.eup %5962 }
0x1b68   :  { %3353 = vrot.lane.b32.xlu0 %v5963_v51, %s6015_s23  ;;  %v5965_v39 = vpop.eup %5964 }
0x1b69   :  { %v3271_v35 = vadd.f32 1.0, %v5965_v39 }
0x1b6b   :  { %5966 = vrcp.f32 %v3271_v35 }
0x1b75   :  { %v5967_v61 = vpop.eup %5966 }
0x1b76   :  { %v3351_v62 = vsub.f32 1.0, %v5967_v61  ;;  %v3357_v0 = vmul.f32 %v5967_v61, %v6701_v30 }
0x1bda   :  { %v3354_v63 = vpop.permute.xlu0 %3353 }
0x1bdb   :  { %v3356_v1 = vmul.f32 %v3354_v63, %v3351_v62 }
0x1bdd   :  { %v6733_v42 = vadd.f32 %v3357_v0, %v3356_v1 }
0x1bdf   :  { %3362 = vrot.lane.b32.xlu1 %v6733_v42, %s6015_s23 }
0x1c51   :  { %v3363_v4 = vpop.permute.xlu1 %3362 }
0x1c52   :  { %5381 = vmatmul.mubr.msk.f32.vlgmr.msra.gmra.mrb[48].mxu0 %vm227_vm3, %v3363_v4  ;;  %5392 = vmatmul.mubr.msk.f32.vlgmr.msra.gmra.mrb[40].mxu1 %vm227_vm3, %v3363_v4 }
0x1c53   :  { %5768 = vmatpush3.bf16.msra.mxu0 %v6591_v28  ;;  %5402 = vmatprep.mubr.msk.f32.mxu0 %vm6011_vm1, %v6012_v7 }
0x1c54   :  { %5769 = vmatprep.subr.bf16.mxu0 %v6010_v2  ;;  %5774 = vmatpush3.bf16.msra.mxu1 %v6499_v16 }
0x1c55   :  { %5775 = vmatprep.subr.bf16.mxu1 %v6010_v2  ;;  %5413 = vmatprep.mubr.msk.f32.mxu1 %vm6011_vm1, %v6012_v7 }
0x1c57   :  { %5771 = vmatpush3.bf16.msra.mxu0 %v6597_v45 }
0x1c58   :  { %5778 = vmatprep.subr.bf16.mxu0 %v6010_v2  ;;  %5777 = vmatpush3.bf16.msra.mxu1 %v6515_v25 }
0x1c59   :  { %5784 = vmatprep.subr.bf16.mxu1 %v6010_v2 }
0x1c5a   :  { %5403 = vmatmul.mubr.msk.f32.vlgmr.msra.gmra.mrb[50].mxu0 %vm227_vm3, %v3363_v4 }
0x1c5b   :  { %5780 = vmatpush3.bf16.msra.mxu0 %v6547_v57  ;;  %5424 = vmatprep.mubr.msk.f32.mxu0 %vm6011_vm1, %v6012_v7 }
0x1c5c   :  { %5781 = vmatprep.subr.bf16.mxu0 %v6010_v2 }
0x1c5f   :  { %5783 = vmatpush3.bf16.msra.mxu0 %v6553_v59 }
0x1c60   :  { %5790 = vmatprep.subr.bf16.mxu0 %v6010_v2 }
0x1d25   :  { %v3432_v9 = vpop.f32.mrb[48].mxu0  ;;  %v3502_v12 = vpop.f32.mrb[40].mxu1 }
0x1d26   :  { %v3506_v8 = vadd.f32 %v3432_v9, %v2316_v6  ;;  %v5382_v11 = vpop.f32.mrb[49].mxu0  ;;  %3514 = vrot.lane.b32.xlu1 %v3502_v12, %s6014_s27  ;;  %v5393_v13 = vpop.f32.mrb[41].mxu1 }
0x1d28   :  { %v4642_v14 = vmul.f32 -1.442695, %v3506_v8 }
0x1d2a   :  { %5968 = vpow2.f32 %v4642_v14 }
0x1d2d   :  { %v3590_v17 = vpop.f32.mrb[50].mxu0 }
0x1d2e   :  { %v5404_v19 = vpop.f32.mrb[51].mxu0  ;;  %v3591_v22 = vadd.f32 %v6632_v56, %v3590_v17 }
0x1d34   :  { %v5969_v23 = vpop.eup %5968 }
0x1d35   :  { %v3510_v21 = vadd.f32 1.0, %v5969_v23 }
0x1d37   :  { %5970 = vrcp.f32 %v3510_v21 }
0x1d41   :  { %v5971_v24 = vpop.eup %5970 }
0x1d42   :  { %v3594_v26 = vmul.f32 %v5971_v24, %v3591_v22 }
0x1d44   :  { %3596 = vrot.lane.b32.xlu0 %v3594_v26, %s6013_s26 }
0x1d98   :  { %v3515_v60 = vpop.permute.xlu1 %3514 }
0x1d99   :  { %v3517_v32 = vadd.f32 %v3515_v60, %v2316_v6 }
0x1d9b   :  { %v4643_v33 = vmul.f32 -1.442695, %v3517_v32 }
0x1db6   :  { %v3597_v15 = vpop.permute.xlu0 %3596 }
0x1db7   :  { %v3599_v29 = vadd.f32 %v3597_v15, %v2316_v6 }
0x1db9   :  { %5972 = vtanh.f32 %v3599_v29 }
0x1dba   :  { %5974 = vpow2.f32 %v4643_v33 }
0x1dc3   :  { %v5973_v27 = vpop.eup %5972 }
0x1dc4   :  { %3603 = vrot.lane.b32.xlu0 %v5973_v27, %s6015_s23  ;;  %v5975_v34 = vpop.eup %5974 }
0x1dc5   :  { %v3521_v36 = vadd.f32 1.0, %v5975_v34 }
0x1dc7   :  { %5976 = vrcp.f32 %v3521_v36 }
0x1dd1   :  { %v5977_v37 = vpop.eup %5976 }
0x1dd2   :  { %v3601_v5 = vsub.f32 1.0, %v5977_v37  ;;  %v3607_v40 = vmul.f32 %v5977_v37, %v6733_v42 }
0x1e36   :  { %v3604_v38 = vpop.permute.xlu0 %3603 }
0x1e37   :  { %v3606_v49 = vmul.f32 %v3604_v38, %v3601_v5 }
0x1e39   :  { %v6765_v41 = vadd.f32 %v3607_v40, %v3606_v49 }
0x1e3b   :  { %3612 = vrot.lane.b32.xlu1 %v6765_v41, %s6015_s23 }
0x1ead   :  { %v3613_v43 = vpop.permute.xlu1 %3612 }
0x1eae   :  { %5414 = vmatmul.mubr.msk.f32.vlgmr.msra.gmra.mrb[42].mxu1 %vm227_vm3, %v3613_v43  ;;  %5425 = vmatmul.mubr.msk.f32.vlgmr.msra.gmra.mrb[52].mxu0 %vm227_vm3, %v3613_v43 }
0x1eaf   :  { %5786 = vmatpush3.bf16.msra.mxu1 %v6591_v28  ;;  %5435 = vmatprep.mubr.msk.f32.mxu1 %vm6011_vm1, %v6012_v7 }
0x1eb0   :  { %5787 = vmatprep.subr.bf16.mxu1 %v6010_v2  ;;  %5792 = vmatpush3.bf16.msra.mxu0 %v6499_v16 }
0x1eb1   :  { %5793 = vmatprep.subr.bf16.mxu0 %v6010_v2  ;;  %5446 = vmatprep.mubr.msk.f32.mxu0 %vm6011_vm1, %v6012_v7 }
0x1eb3   :  { %5789 = vmatpush3.bf16.msra.mxu1 %v6597_v45 }
0x1eb4   :  { %5796 = vmatprep.subr.bf16.mxu1 %v6010_v2  ;;  %5795 = vmatpush3.bf16.msra.mxu0 %v6515_v25 }
0x1eb5   :  { %5802 = vmatprep.subr.bf16.mxu0 %v6010_v2 }
0x1eb6   :  { %5436 = vmatmul.mubr.msk.f32.vlgmr.msra.gmra.mrb[44].mxu1 %vm227_vm3, %v3613_v43 }
0x1eb7   :  { %5798 = vmatpush3.bf16.msra.mxu1 %v6547_v57  ;;  %5457 = vmatprep.mubr.msk.f32.mxu1 %vm6011_vm1, %v6012_v7 }
0x1eb8   :  { %5799 = vmatprep.subr.bf16.mxu1 %v6010_v2 }
0x1ebb   :  { %5801 = vmatpush3.bf16.msra.mxu1 %v6553_v59 }
0x1ebc   :  { %5808 = vmatprep.subr.bf16.mxu1 %v6010_v2 }
0x1f81   :  { %v3682_v53 = vpop.f32.mrb[42].mxu1  ;;  %v3752_v48 = vpop.f32.mrb[52].mxu0 }
0x1f82   :  { %v3756_v55 = vadd.f32 %v3682_v53, %v2321_v44  ;;  %3764 = vrot.lane.b32.xlu1 %v3752_v48, %s6014_s27  ;;  %v5415_v10 = vpop.f32.mrb[43].mxu1  ;;  %v5426_v50 = vpop.f32.mrb[53].mxu0 }
0x1f84   :  { %v4647_v51 = vmul.f32 -1.442695, %v3756_v55 }
0x1f86   :  { %5978 = vpow2.f32 %v4647_v51  ;;  %v6016_v51 = vmov 0  }
0x1f87   :  { %5847 = vset.pattern.permute.xlu0 %v6016_v51 }
0x1f89   :  { %v3840_v52 = vpop.f32.mrb[44].mxu1 }
0x1f8a   :  { %v5437_v31 = vpop.f32.mrb[45].mxu1  ;;  %v3841_v35 = vadd.f32 %v6632_v56, %v3840_v52 }
0x1f90   :  { %v5979_v3 = vpop.eup %5978 }
0x1f91   :  { %v3760_v39 = vadd.f32 1.0, %v5979_v3 }
0x1f93   :  { %5980 = vrcp.f32 %v3760_v39 }
0x1f9d   :  { %v5981_v61 = vpop.eup %5980 }
0x1f9e   :  { %v3844_v62 = vmul.f32 %v5981_v61, %v3841_v35 }
0x1fa0   :  { %3846 = vrot.lane.b32.xlu0 %v3844_v62, %s6013_s26 }
0x1ff4   :  { %v3765_v1 = vpop.permute.xlu1 %3764 }
0x1ff5   :  { %v3767_v4 = vadd.f32 %v3765_v1, %v2321_v44 }
0x1ff7   :  { %v4648_v6 = vmul.f32 -1.442695, %v3767_v4 }
0x2012   :  { %v3847_v47 = vpop.permute.xlu0 %3846 }
0x2013   :  { %v3849_v63 = vadd.f32 %v3847_v47, %v2321_v44 }
0x2015   :  { %5982 = vtanh.f32 %v3849_v63 }
0x2016   :  { %5984 = vpow2.f32 %v4648_v6  ;;  %v4361_v6 = vld [vmem:[%s6912_s12] sm:$0xff] }
0x201f   :  { %v5983_v0 = vpop.eup %5982 }
0x2020   :  { %3853 = vrot.lane.b32.xlu0 %v5983_v0, %s6015_s23  ;;  %v5985_v9 = vpop.eup %5984 }
0x2021   :  { %v3771_v12 = vadd.f32 1.0, %v5985_v9  ;;  %v4363_v9 = vld [vmem:[%s6912_s12 + $0x10] sm:$0xff] }
0x2023   :  { %5986 = vrcp.f32 %v3771_v12 }
0x202d   :  { %v5987_v8 = vpop.eup %5986 }
0x202e   :  { %v3851_v11 = vsub.f32 1.0, %v5987_v8  ;;  %v3857_v14 = vmul.f32 %v5987_v8, %v6765_v41  ;;  %v4364_v8 = vld [vmem:[%s6912_s12 + $0x18] sm:$0xff] }
0x2092   :  { %v3854_v13 = vpop.permute.xlu0 %3853 }
0x2093   :  { %v3856_v17 = vmul.f32 %v3854_v13, %v3851_v11  ;;  %v5830_v11 = vpack.c.bf16 %v4364_v8, %v4363_v9 }
0x2095   :  { %v6797_v19 = vadd.f32 %v3857_v14, %v3856_v17 }
0x2097   :  { %3862 = vrot.lane.b32.xlu1 %v6797_v19, %s6015_s23 }
0x2109   :  { %v3863_v23 = vpop.permute.xlu1 %3862 }
0x210a   :  { %5447 = vmatmul.mubr.msk.f32.vlgmr.msra.gmra.mrb[54].mxu0 %vm227_vm3, %v3863_v23  ;;  %5458 = vmatmul.mubr.msk.f32.vlgmr.msra.gmra.mrb[46].mxu1 %vm227_vm3, %v3863_v23 }
0x210b   :  { %5804 = vmatpush3.bf16.msra.mxu0 %v6591_v28  ;;  %5468 = vmatprep.mubr.msk.f32.mxu0 %vm6011_vm1, %v6012_v7 }
0x210c   :  { %5805 = vmatprep.subr.bf16.mxu0 %v6010_v2  ;;  %5810 = vmatpush3.bf16.msra.mxu1 %v6499_v16  ;;  %v2326_v16 = vadd.f32 %v6622_v46, %v6627_v20 }
0x210d   :  { %5811 = vmatprep.subr.bf16.mxu1 %v6010_v2  ;;  %5479 = vmatprep.mubr.msk.f32.mxu1 %vm6011_vm1, %v6012_v7 }
0x210f   :  { %5807 = vmatpush3.bf16.msra.mxu0 %v6597_v45 }
0x2110   :  { %5814 = vmatprep.subr.bf16.mxu0 %v6010_v2  ;;  %5813 = vmatpush3.bf16.msra.mxu1 %v6515_v25 }
0x2111   :  { %5820 = vmatprep.subr.bf16.mxu1 %v6010_v2 }
0x2112   :  { %5469 = vmatmul.mubr.msk.f32.vlgmr.msra.gmra.mrb[56].mxu0 %vm227_vm3, %v3863_v23 }
0x2113   :  { %5816 = vmatpush3.bf16.msra.mxu0 %v6547_v57  ;;  %5490 = vmatprep.mubr.msk.f32.mxu0 %vm6011_vm1, %v6012_v7 }
0x2114   :  { %5817 = vmatprep.subr.bf16.mxu0 %v6010_v2 }
0x2117   :  { %5819 = vmatpush3.bf16.msra.mxu0 %v6553_v59 }
0x2118   :  { %5826 = vmatprep.subr.bf16.mxu0 %v6010_v2 }
0x21dd   :  { %v3932_v21 = vpop.f32.mrb[54].mxu0  ;;  %v4002_v25 = vpop.f32.mrb[46].mxu1 }
0x21de   :  { %v4006_v22 = vadd.f32 %v3932_v21, %v2326_v16  ;;  %v5448_v24 = vpop.f32.mrb[55].mxu0  ;;  %4014 = vrot.lane.b32.xlu1 %v4002_v25, %s6014_s27  ;;  %v5459_v26 = vpop.f32.mrb[47].mxu1 }
0x21e0   :  { %v4652_v57 = vmul.f32 -1.442695, %v4006_v22 }
0x21e2   :  { %5988 = vpow2.f32 %v4652_v57 }
0x21e5   :  { %v4090_v15 = vpop.f32.mrb[56].mxu0 }
0x21e6   :  { %v5470_v29 = vpop.f32.mrb[57].mxu0  ;;  %v4091_v59 = vadd.f32 %v6632_v56, %v4090_v15 }
0x21ec   :  { %v5989_v27 = vpop.eup %5988 }
0x21ed   :  { %v4010_v60 = vadd.f32 1.0, %v5989_v27 }
0x21ef   :  { %5990 = vrcp.f32 %v4010_v60 }
0x21f9   :  { %v5991_v32 = vpop.eup %5990 }
0x21fa   :  { %v4094_v33 = vmul.f32 %v5991_v32, %v4091_v59 }
0x21fc   :  { %4096 = vrot.lane.b32.xlu0 %v4094_v33, %s6013_s26 }
0x2250   :  { %v4015_v37 = vpop.permute.xlu1 %4014 }
0x2251   :  { %v4017_v5 = vadd.f32 %v4015_v37, %v2326_v16 }
0x2253   :  { %v4653_v38 = vmul.f32 -1.442695, %v4017_v5  ;;  %v4660_v5 = vld [vmem:[%s6914_s13] ss:$0 sm:$0xff] }
0x226e   :  { %v4097_v20 = vpop.permute.xlu0 %4096 }
0x226f   :  { %v4099_v34 = vadd.f32 %v4097_v20, %v2326_v16  ;;  %v4449_v20 = vld [vmem:[%s6913_s14 + $0x8] sm:$0xff] }
0x2271   :  { %5992 = vtanh.f32 %v4099_v34 }
0x2272   :  { %5994 = vpow2.f32 %v4653_v38 }
0x227b   :  { %v5993_v36 = vpop.eup %5992 }
0x227c   :  { %4103 = vrot.lane.b32.xlu0 %v5993_v36, %s6015_s23  ;;  %v5995_v49 = vpop.eup %5994  ;;  %v4451_v36 = vld [vmem:[%s6913_s14 + $0x18] sm:$0x3f] }
0x227d   :  { %v4021_v40 = vadd.f32 1.0, %v5995_v49 }
0x227f   :  { %5996 = vrcp.f32 %v4021_v40 }
0x2289   :  { %v5997_v43 = vpop.eup %5996 }
0x228a   :  { %v4101_v44 = vsub.f32 1.0, %v5997_v43  ;;  %v4107_v55 = vmul.f32 %v5997_v43, %v6797_v19 }
0x22ee   :  { %v4104_v53 = vpop.permute.xlu0 %4103 }
0x22ef   :  { %v4106_v48 = vmul.f32 %v4104_v53, %v4101_v44  ;;  %v4662_v44 = vld [vmem:[%s6915_s15] ss:$0 sm:$0xff] }
0x22f1   :  { %v6829_v10 = vadd.f32 %v4107_v55, %v4106_v48 }
0x22f3   :  { %4112 = vrot.lane.b32.xlu1 %v6829_v10, %s6015_s23 }
0x2365   :  { %v4113_v50 = vpop.permute.xlu1 %4112 }
0x2366   :  { %5480 = vmatmul.mubr.msk.f32.vlgmr.msra.gmra.mrb[48].mxu1 %vm227_vm3, %v4113_v50  ;;  %5491 = vmatmul.mubr.msk.f32.vlgmr.msra.gmra.mrb[58].mxu0 %vm227_vm3, %v4113_v50 }
0x2367   :  { %5822 = vmatpush3.bf16.msra.mxu1 %v6591_v28  ;;  %5501 = vmatprep.mubr.msk.f32.mxu1 %vm6011_vm1, %v6012_v7  ;;  %v2331_v28 = vadd.f32 %v6625_v54, %v6622_v46  ;;  %v2341_v46 = vld [vmem:[%s6911_s0] sm:$0xff] }
0x2368   :  { %5823 = vmatprep.subr.bf16.mxu1 %v6010_v2  ;;  %5512 = vmatprep.mubr.msk.f32.mxu0 %vm6011_vm1, %v6012_v7 }
0x236b   :  { %5825 = vmatpush3.bf16.msra.mxu1 %v6597_v45 }
0x236c   :  { %5832 = vmatprep.subr.bf16.mxu1 %v6010_v2 }
0x236e   :  { %5502 = vmatmul.mubr.msk.f32.vlgmr.msra.gmra.mrb[50].mxu1 %vm227_vm3, %v4113_v50 }
0x236f   :  { %5523 = vmatprep.mubr.msk.f32.mxu1 %vm6011_vm1, %v6012_v7 }
0x2439   :  { %v4182_v52 = vpop.f32.mrb[48].mxu1  ;;  %v4252_v31 = vpop.f32.mrb[58].mxu0 }
0x243a   :  { %v4256_v3 = vadd.f32 %v4182_v52, %v2331_v28  ;;  %4264 = vrot.lane.b32.xlu1 %v4252_v31, %s6014_s27  ;;  %v5481_v39 = vpop.f32.mrb[49].mxu1  ;;  %v5492_v35 = vpop.f32.mrb[59].mxu0 }
0x243c   :  { %v4657_v45 = vmul.f32 -1.442695, %v4256_v3 }
0x243e   :  { %5998 = vpow2.f32 %v4657_v45 }
0x2441   :  { %v4340_v61 = vpop.f32.mrb[50].mxu1 }
0x2442   :  { %v5503_v62 = vpop.f32.mrb[51].mxu1  ;;  %v4341_v7 = vadd.f32 %v6632_v56, %v4340_v61  ;;  %v4362_v56 = vld [vmem:[%s6912_s12 + $0x8] sm:$0xff] }
0x2443   :  { %v5827_v12 = vpack.c.bf16 %v4362_v56, %v4361_v6 }
0x2445   :  { %5828 = vmatpush3.bf16.msra.mxu0 %v5827_v12 }
0x2446   :  { %5829 = vmatprep.subr.bf16.mxu0 %v6010_v2 }
0x2448   :  { %v5999_v47 = vpop.eup %5998 }
0x2449   :  { %v4260_v63 = vadd.f32 1.0, %v5999_v47  ;;  %5831 = vmatpush3.bf16.msra.mxu0 %v5830_v11 }
0x244b   :  { %6000 = vrcp.f32 %v4260_v63 }
0x2455   :  { %v6001_v0 = vpop.eup %6000 }
0x2456   :  { %v4344_v1 = vmul.f32 %v6001_v0, %v4341_v7 }
0x2458   :  { %4346 = vrot.lane.b32.xlu0 %v4344_v1, %s6013_s26 }
0x245c   :  { %2343 = vperm.xlu0 %5847, %v2341_v46  }
0x24ac   :  { %v4265_v14 = vpop.permute.xlu1 %4264 }
0x24ad   :  { %v4267_v17 = vadd.f32 %v4265_v14, %v2331_v28 }
0x24af   :  { %v4658_v23 = vmul.f32 -1.442695, %v4267_v17 }
0x24ca   :  { %v4347_v54 = vpop.permute.xlu0 %4346 }
0x24cb   :  { %v4349_v4 = vadd.f32 %v4347_v54, %v2331_v28 }
0x24cd   :  { %6002 = vtanh.f32 %v4349_v4 }
0x24ce   :  { %6004 = vpow2.f32 %v4658_v23 }
0x24d7   :  { %v6003_v13 = vpop.eup %6002 }
0x24d8   :  { %4353 = vrot.lane.b32.xlu1 %v6003_v13, %s6015_s23  ;;  %v6005_v16 = vpop.eup %6004 }
0x24d9   :  { %v4271_v25 = vadd.f32 1.0, %v6005_v16 }
0x24db   :  { %v2344_v21 = vpop.permute.xlu0 %2343  ;;  %6006 = vrcp.f32 %v4271_v25 }
0x24dc   :  { %vm2609_vm4 = vcmp.eq.s32.totalorder %v2344_v21, 1  ;;  %vm2859_vm5 = vcmp.eq.s32.totalorder %v2344_v21, 2  ;;  %vm3109_vm6 = vcmp.eq.s32.totalorder %v2344_v21, 3  ;;  %vm3359_vm7 = vcmp.eq.s32.totalorder %v2344_v21, 4 }
0x24dd   :  { %v2610_v22 = vsel %vm2609_vm4, %v6637_v18, 0.0  ;;  %vm3609_vm8 = vcmp.eq.s32.totalorder %v2344_v21, 5  ;;  %vm3859_vm9 = vcmp.eq.s32.totalorder %v2344_v21, 6  ;;  %vm4109_vm10 = vcmp.eq.s32.totalorder %v2344_v21, 7 }
0x24de   :  { %v2860_v24 = vsel %vm2859_vm5, %v6669_v58, %v2610_v22  ;;  %vm4359_vm11 = vcmp.eq.s32.totalorder %v2344_v21, 8 }
0x24df   :  { %v3110_v26 = vsel %vm3109_vm6, %v6701_v30, %v2860_v24 }
0x24e0   :  { %v3360_v57 = vsel %vm3359_vm7, %v6733_v42, %v3110_v26 }
0x24e1   :  { %v3610_v29 = vsel %vm3609_vm8, %v6765_v41, %v3360_v57  ;;  %v4448_v41 = vld [vmem:[%s6913_s14] sm:$0xff] }
0x24e2   :  { %v3860_v18 = vsel %vm3859_vm9, %v6797_v19, %v3610_v29  ;;  %v4450_v19 = vld [vmem:[%s6913_s14 + $0x10] sm:$0xff]  ;;  %v5833_v34 = vpack.c.bf16 %v4449_v20, %v4448_v41 }
0x24e3   :  { %v4110_v33 = vsel %vm4109_vm10, %v6829_v10, %v3860_v18  ;;  %v5836_v37 = vpack.c.bf16 %v4451_v36, %v4450_v19 }
0x24e4   :  { %5834 = vmatpush3.bf16.msra.mxu1 %v5833_v34 }
0x24e5   :  { %v6007_v15 = vpop.eup %6006  ;;  %5835 = vmatprep.subr.bf16.mxu1 %v6010_v2 }
0x24e6   :  { %v4351_v27 = vsub.f32 1.0, %v6007_v15  ;;  %v4357_v59 = vmul.f32 %v6007_v15, %v6829_v10 }
0x24e8   :  { %5838 = vmatpush3.bf16.msk.msra.mxu1 %vm5837_vm14, %v5836_v37 }
0x254a   :  { %v4354_v60 = vpop.permute.xlu1 %4353 }
0x254b   :  { %v4356_v32 = vmul.f32 %v4354_v60, %v4351_v27 }
0x254d   :  { %v4358_v58 = vadd.f32 %v4357_v59, %v4356_v32 }
0x254f   :  { %v4360_v30 = vsel %vm4359_vm11, %v4358_v58, %v4110_v33 }
0x2550   :  { %4373 = vrot.lane.b32.xlu1 %v4360_v30, %s6015_s23 }
0x25c2   :  { %v4374_v42 = vpop.permute.xlu1 %4373 }
0x25c3   :  { %5513 = vmatmul.mubr.msk.f32.vlgmr.msra.gmra.mrb[60].mxu0 %vm227_vm3, %v4374_v42 }
0x2696   :  { %v4443_v38 = vpop.f32.mrb[60].mxu0 }
0x2697   :  { %v4444_v49 = vadd.f32 %v4660_v5, %v4443_v38  ;;  %v5514_v40 = vpop.f32.mrb[61].mxu0 }
0x2699   :  { %6008 = vtanh.f32 %v4444_v49 }
0x26a3   :  { %v6009_v43 = vpop.eup %6008 }
0x26a4   :  { %5524 = vmatmul.mubr.msk.f32.vlgmr.msra.gmra.mrb[52].mxu1 %vm4459_vm15, %v6009_v43 }
0x2777   :  { %v4533_v53 = vpop.f32.mrb[52].mxu1 }
0x2778   :  { %v4534_v2 = vadd.f32 %v4662_v44, %v4533_v53  ;;  %v5525_v48 = vpop.f32.mrb[53].mxu1 }
0x277a   :  { %4538 = vst.msk [vmem:[%s6916_s16] sm:$0xff] %vm4537_vm0, %v4534_v2 }

</bundles_post_ra>
